<compile_context>
chip_gen: v7x
topology: tpu7x:2x2x1
jax: 0.10.0
libtpu: 0.0.40
codegen_flags: <defaults>
</compile_context>

<pallas_src>
import jax
import jax.numpy as jnp
from jax.experimental import pallas as pl
from jax.experimental.pallas import tpu as pltpu

EPS = 1.0e-3                 # CharbonnierLoss eps
EPS2 = EPS * EPS


# ----------------------------------------------------------------------------
# Deterministic synthetic parameter init (mirrors generate_lbcnn_filters /
# generate_lbp_kernel shapes & structure; no checkpoint loading).
# ----------------------------------------------------------------------------
def generate_lbcnn_filters(shape, sparcity=0.9, seed=71):
    """Random LBP/LBCNN-style filters with values in {-1, 0, +1}."""
    key = jax.random.PRNGKey(seed)
    k_sign, k_keep = jax.random.split(key)
    signs = jax.random.bernoulli(k_sign, 0.5, shape).astype(jnp.float32) * 2.0 - 1.0
    keep = (jax.random.uniform(k_keep, shape) <= sparcity).astype(jnp.float32)
    return signs * keep


def generate_lbp_kernel(in_channels, out_channels, kernel_size=3, seed=71):
    k = generate_lbcnn_filters(
        (out_channels, in_channels, kernel_size, kernel_size), seed=seed
    )
    c = kernel_size // 2
    k = k.at[0].set(0.0)                                   # filter 0 = identity
    k = k.at[0, :, c, c].set(0.5 * kernel_size ** 2)
    return k


# ----------------------------------------------------------------------------
# Banded weight matrix: folds the dy taps of the 3x3 conv into the MXU
# contraction.  B[oc*TR + y, dx*SLAB + r] = w[oc, r - y, dx] for 0 <= r-y < KH.
# conv_chunk = B @ concat_dx(slab[:, dx:dx+OW]) gives the VALID conv rows
# [rbase, rbase+TR) for all OC channels in one matmul.
# ----------------------------------------------------------------------------
def _build_banded_weights(wf, tile_rows):
    OC, KH, KW = wf.shape
    slab = tile_rows + KH - 1
    y = jnp.arange(tile_rows)[:, None, None]
    dy = jnp.arange(KH)[None, :, None]
    r = jnp.arange(slab)[None, None, :]
    shift = (r == y + dy).astype(jnp.float32)              # (TR, KH, SLAB)
    band = jnp.einsum("odx,ydr->oyxr", wf, shift)          # (OC, TR, KW, SLAB)
    return band.reshape(OC * tile_rows, KW * slab)


# ----------------------------------------------------------------------------
# Pallas kernel: per-(batch, row-chunk) diff + banded-matmul conv + Charbonnier
# ----------------------------------------------------------------------------
def lbp_loss_pallas(x, target, weight, *, row_tile=8):
    B, C, H, W = x.shape
    OC, CG, KH, KW = weight.shape
    assert C == 1 and CG == 1, "LBPLoss grouped-conv code path requires in_channels == 1"
    OH, OW = H - KH + 1, W - KW + 1
    assert OH >= 1 and OW >= 1

    TR = min(row_tile, OH)          # output rows per chunk (keeps MXU overcompute ~3x, VMEM small)
    SLAB = TR + KH - 1              # input rows needed by one chunk
    NCH = pl.cdiv(OH, TR)           # row chunks per image
    M = OC * TR                     # matmul M dim
    KB = KW * SLAB                  # matmul K dim (Mosaic pads 30 -> 32 sublanes internally)

    # Free reshapes only (no im2col, no padding pass over the images).
    xr = x.reshape(B, H, W)
    tg = target.reshape(B, H, W)
    wf = weight.reshape(OC, KH, KW).astype(jnp.float32)
    band = _build_banded_weights(wf, TR)                    # (M, KB), tiny

    inv_count = 1.0 / float(B * OC * OH * OW)               # global mean divisor

    def kernel(x_ref, t_ref, b_ref, o_ref):
        c = pl.program_id(1)
        # Clamp the last chunk so the slab slice never leaves the image; the duplicated
        # rows are de-counted with the in-kernel row mask below.
        rbase = jnp.minimum(c * TR, OH - TR)

        # Diff once in VMEM (conv is linear): only the rows this chunk needs.
        sx = x_ref[0, pl.ds(rbase, SLAB), :].astype(jnp.float32)   # (SLAB, W)
        st = t_ref[0, pl.ds(rbase, SLAB), :].astype(jnp.float32)
        slab = sx - st

        # KW valid-width lane-sliced views -> (KW*SLAB, OW) rhs.  dx=0 is an aligned
        # prefix slice; dx=1,2 are the only 2 cross-lane relayouts per chunk.
        rhs = jnp.concatenate([slab[:, dx:dx + OW] for dx in range(KW)], axis=0)

        # One MXU matmul: all OC channels x TR rows of the VALID conv at once.
        conv = jnp.dot(b_ref[...], rhs, preferred_element_type=jnp.float32)   # (M, OW)
        charb = jnp.sqrt(conv * conv + EPS2)

        # Reduce lanes first, then mask out rows already counted by the previous chunk
        # (only the clamped last chunk has any) -- mask generated in-kernel, applied
        # after the reduction so it costs M ops, not M*OW.
        rowsum = jnp.sum(charb, axis=1, keepdims=True)                        # (M, 1)
        yloc = jax.lax.broadcasted_iota(jnp.int32, (M, 1), 0) % TR
        fresh = (rbase + yloc) >= c * TR
        total = jnp.sum(jnp.where(fresh, rowsum, 0.0))

        # Lane-dense unmasked store of this (b, chunk) partial sum.
        o_ref[...] = jnp.full((1, 1, 8, 128), total, dtype=jnp.float32)

    out = pl.pallas_call(
        kernel,
        out_shape=jax.ShapeDtypeStruct((B, NCH, 8, 128), jnp.float32),
        grid_spec=pltpu.PrefetchScalarGridSpec(
            num_scalar_prefetch=0,
            grid=(B, NCH),
            in_specs=[
                pl.BlockSpec((1, H, W), lambda b, c: (b, 0, 0)),    # x (fetched once per b)
                pl.BlockSpec((1, H, W), lambda b, c: (b, 0, 0)),    # target
                pl.BlockSpec((M, KB), lambda b, c: (0, 0)),         # banded filter matrix
            ],
            out_specs=pl.BlockSpec((1, 1, 8, 128), lambda b, c: (b, c, 0, 0)),
        ),
        compiler_params=pltpu.CompilerParams(
            # Both axes are independent partial sums -> megacore-shardable even for B == 1.
            dimension_semantics=("parallel", "parallel"),
        ),
        cost_estimate=pl.CostEstimate(
            flops=B * NCH * (2 * M * KB * OW + 3 * M * OW),
            transcendentals=B * NCH * M * OW,
            bytes_accessed=(2 * B * H * W * x.dtype.itemsize
                            + M * KB * 4 + B * NCH * 8 * 128 * 4),
        ),
    )(xr, tg, band)

    # Tiny final reduction + mean scaling in the wrapper (B*NCH f32 values).
    return jnp.sum(out[:, :, 0, 0]) * inv_count


# ----------------------------------------------------------------------------
# Pure-JAX reference (lax conv, NCHW) for a sanity check
# ----------------------------------------------------------------------------
def lbp_loss_reference(x, target, weight):
    dn = ("NCHW", "OIHW", "NCHW")
    conv = lambda a: jax.lax.conv_general_dilated(
        a.astype(jnp.float32), weight.astype(jnp.float32), (1, 1), "VALID",
        dimension_numbers=dn, precision=jax.lax.Precision.HIGHEST)
    d = conv(x) - conv(target)
    return jnp.mean(jnp.sqrt(d * d + EPS2))


if __name__ == "__main__":
    in_channels = 1          # literal LBPLoss code (groups == in_channels) => 1
    out_channels = 64
    kernel_size = 3
    B, H, W = 2, 16, 16

    weight = generate_lbp_kernel(
        in_channels, out_channels - out_channels % in_channels, kernel_size, seed=71
    )  # (64, 1, 3, 3)

    key = jax.random.PRNGKey(0)
    kx, kt = jax.random.split(key)
    x = jax.random.normal(kx, (B, in_channels, H, W), dtype=jnp.float32)
    target = jax.random.normal(kt, (B, in_channels, H, W), dtype=jnp.float32)

    loss = jax.block_until_ready(lbp_loss_pallas(x, target, weight))
    ref = jax.block_until_ready(lbp_loss_reference(x, target, weight))

    assert bool(jnp.isfinite(loss))
    assert abs(float(loss) - float(ref)) <= 1e-2 * max(1.0, abs(float(ref))), (loss, ref)
    print("KERNEL_OK")
</pallas_src>

<mosaic_0001>
module attributes {stable_mosaic.version = 11 : i64} {
  func.func @kernel(%arg0: i32, %arg1: i32, %arg2: memref<1x16x16xf32, #tpu.memory_space<vmem>>, %arg3: memref<1x16x16xf32, #tpu.memory_space<vmem>>, %arg4: memref<512x30xf32, #tpu.memory_space<vmem>>, %arg5: memref<1x1x8x128xf32, #tpu.memory_space<vmem>>) attributes {dimension_semantics = [#tpu.dimension_semantics<parallel>, #tpu.dimension_semantics<parallel>], iteration_bounds = array<i64: 2, 2>, scalar_prefetch = 0 : i64, scratch_operands = 0 : i64, tpu.core_type = #tpu.core_type<tc>, window_params = [{transform_indices = @transform_0, window_bounds = array<i64: 1, 16, 16>}, {transform_indices = @transform_1, window_bounds = array<i64: 1, 16, 16>}, {pipeline_mode = #tpu.pipeline_mode<synchronous>, transform_indices = @transform_2, window_bounds = array<i64: 512, 30>}, {transform_indices = @transform_3, window_bounds = array<i64: 1, 1, 8, 128>}]} {
    %c8_i32 = arith.constant 8 : i32
    %0 = arith.muli %arg1, %c8_i32 : i32
    %c6_i32 = arith.constant 6 : i32
    %1 = arith.minsi %0, %c6_i32 : i32
    %c0 = arith.constant 0 : index
    %2 = arith.index_cast %1 : i32 to index
    %c0_0 = arith.constant 0 : index
    %3 = vector.load %arg2[%c0, %2, %c0_0] : memref<1x16x16xf32, #tpu.memory_space<vmem>>, vector<1x10x16xf32>
    %4 = vector.shape_cast %3 : vector<1x10x16xf32> to vector<10x16xf32>
    %c0_1 = arith.constant 0 : index
    %5 = arith.index_cast %1 : i32 to index
    %c0_2 = arith.constant 0 : index
    %6 = vector.load %arg3[%c0_1, %5, %c0_2] : memref<1x16x16xf32, #tpu.memory_space<vmem>>, vector<1x10x16xf32>
    %7 = vector.shape_cast %6 : vector<1x10x16xf32> to vector<10x16xf32>
    %8 = arith.subf %4, %7 : vector<10x16xf32>
    %9 = vector.extract_strided_slice %8 {offsets = [0, 0], sizes = [10, 14], strides = [1, 1]} : vector<10x16xf32> to vector<10x14xf32>
    %10 = vector.extract_strided_slice %8 {offsets = [0, 1], sizes = [10, 14], strides = [1, 1]} : vector<10x16xf32> to vector<10x14xf32>
    %11 = vector.extract_strided_slice %8 {offsets = [0, 2], sizes = [10, 14], strides = [1, 1]} : vector<10x16xf32> to vector<10x14xf32>
    %12 = tpu.concatenate %9, %10, %11 in 0 : vector<10x14xf32>, vector<10x14xf32>, vector<10x14xf32> -> vector<30x14xf32>
    %c0_3 = arith.constant 0 : index
    %c0_4 = arith.constant 0 : index
    %13 = vector.load %arg4[%c0_3, %c0_4] : memref<512x30xf32, #tpu.memory_space<vmem>>, vector<512x30xf32>
    %cst = arith.constant dense<0.000000e+00> : vector<512x14xf32>
    %14 = tpu.matmul %13, %12, %cst {dimension_numbers = #tpu.dot_dimension_numbers<[1], [0], [0], [1], [0, 0, 1, 1], [], []>} : vector<512x30xf32>, vector<30x14xf32>, vector<512x14xf32> -> vector<512x14xf32>
    %15 = arith.mulf %14, %14 : vector<512x14xf32>
    %cst_5 = arith.constant 9.99999997E-7 : f32
    %16 = vector.broadcast %cst_5 : f32 to vector<512x14xf32>
    %17 = arith.addf %15, %16 : vector<512x14xf32>
    %18 = math.sqrt %17 : vector<512x14xf32>
    %cst_6 = arith.constant dense<0.000000e+00> : vector<512xf32>
    %19 = vector.multi_reduction <add>, %18, %cst_6 [1] : vector<512x14xf32> to vector<512xf32>
    %20 = vector.shape_cast %19 : vector<512xf32> to vector<512x1xf32>
    %21 = tpu.iota {dimensions = array<i32: 0>} : vector<512x1xi32>
    %c8_i32_7 = arith.constant 8 : i32
    %c0_i32 = arith.constant 0 : i32
    %22 = arith.cmpi eq, %c8_i32_7, %c0_i32 : i32
    %c1_i32 = arith.constant 1 : i32
    %23 = arith.select %22, %c1_i32, %c8_i32_7 : i32
    %24 = vector.broadcast %23 : i32 to vector<512x1xi32>
    %25 = arith.remsi %21, %24 : vector<512x1xi32>
    %c0_i32_8 = arith.constant 0 : i32
    %26 = vector.broadcast %c0_i32_8 : i32 to vector<512x1xi32>
    %27 = arith.cmpi ne, %25, %26 : vector<512x1xi32>
    %c0_i32_9 = arith.constant 0 : i32
    %28 = vector.broadcast %c0_i32_9 : i32 to vector<512x1xi32>
    %29 = arith.cmpi slt, %25, %28 : vector<512x1xi32>
    %c0_i32_10 = arith.constant 0 : i32
    %30 = arith.cmpi slt, %23, %c0_i32_10 : i32
    %31 = vector.broadcast %30 : i1 to vector<512x1xi1>
    %32 = vector.broadcast %31 : vector<512x1xi1> to vector<512x1xi1>
    %33 = arith.xori %29, %32 : vector<512x1xi1>
    %34 = arith.andi %33, %27 : vector<512x1xi1>
    %35 = vector.broadcast %23 : i32 to vector<512x1xi32>
    %36 = arith.addi %25, %35 : vector<512x1xi32>
    %37 = arith.select %34, %36, %25 : vector<512x1xi1>, vector<512x1xi32>
    %38 = vector.broadcast %1 : i32 to vector<512x1xi32>
    %39 = arith.addi %38, %37 : vector<512x1xi32>
    %c8_i32_11 = arith.constant 8 : i32
    %40 = arith.muli %arg1, %c8_i32_11 : i32
    %41 = vector.broadcast %40 : i32 to vector<512x1xi32>
    %42 = arith.cmpi sge, %39, %41 : vector<512x1xi32>
    %cst_12 = arith.constant 0.000000e+00 : f32
    %43 = vector.broadcast %cst_12 : f32 to vector<512x1xf32>
    %44 = arith.select %42, %20, %43 : vector<512x1xi1>, vector<512x1xf32>
    %45 = vector.shape_cast %44 : vector<512x1xf32> to vector<1x512x1xf32>
    %cst_13 = arith.constant dense<0.000000e+00> : vector<1xf32>
    %46 = vector.multi_reduction <add>, %45, %cst_13 [1, 2] : vector<1x512x1xf32> to vector<1xf32>
    %47 = vector.shape_cast %46 : vector<1xf32> to vector<1x1x1xf32>
    %48 = vector.extract %47[0, 0, 0] : f32 from vector<1x1x1xf32>
    %49 = vector.broadcast %48 : f32 to vector<1x1x8x128xf32>
    %c0_14 = arith.constant 0 : index
    %c0_15 = arith.constant 0 : index
    %c0_16 = arith.constant 0 : index
    %c0_17 = arith.constant 0 : index
    %50 = vector.load %arg5[%c0_14, %c0_15, %c0_16, %c0_17] : memref<1x1x8x128xf32, #tpu.memory_space<vmem>>, vector<1x1x8x128xf32>
    tpu.vector_store %arg5[%c0_14, %c0_15, %c0_16, %c0_17], %49 {strides = array<i32>} : memref<1x1x8x128xf32, #tpu.memory_space<vmem>>, vector<1x1x8x128xf32>,
    return
  }
  func.func @transform_0(%arg0: i32, %arg1: i32) -> (i32, i32, i32) {
    %c0_i32 = arith.constant 0 : i32
    %c0_i32_0 = arith.constant 0 : i32
    %c0_i32_1 = arith.constant 0 : i32
    return %arg0, %c0_i32, %c0_i32_0 : i32, i32, i32
  }
  func.func @transform_1(%arg0: i32, %arg1: i32) -> (i32, i32, i32) {
    %c0_i32 = arith.constant 0 : i32
    %c0_i32_0 = arith.constant 0 : i32
    %c0_i32_1 = arith.constant 0 : i32
    return %arg0, %c0_i32, %c0_i32_0 : i32, i32, i32
  }
  func.func @transform_2(%arg0: i32, %arg1: i32) -> (i32, i32) {
    %c0_i32 = arith.constant 0 : i32
    %c0_i32_0 = arith.constant 0 : i32
    %c0_i32_1 = arith.constant 0 : i32
    return %c0_i32, %c0_i32_0 : i32, i32
  }
  func.func @transform_3(%arg0: i32, %arg1: i32) -> (i32, i32, i32, i32) {
    %c0_i32 = arith.constant 0 : i32
    %c0_i32_0 = arith.constant 0 : i32
    %c0_i32_1 = arith.constant 0 : i32
    return %arg0, %arg1, %c0_i32, %c0_i32_0 : i32, i32, i32, i32
  }
}

</mosaic_0001>

<bundles_post_ra>
// kernel: tpu_custom_call.1
= control target key start
LH: loop header
LB: loop body
LE: loop exit
PB: predicated region body
PF: predicated region fallthrough
CT: control target
= control target key end

     0   :  { %8 = vsyncpa [#allocation3], 0  ;;  %s5081_s0 = inlined_call_operand.vmem [shape: f32[2,16,16], index: 0, kind: input, shape index: {}]   ;;  %s5082_s1 = inlined_call_operand.vmem [shape: f32[2,16,16], index: 1, kind: input, shape index: {}]   ;;  %s5083_s2 = inlined_call_operand.vmem [shape: f32[512,30], index: 2, kind: input, shape index: {}]   ;;  %s5084_s3 = inlined_call_operand.hbm [shape: f32[2,2,8,128], index: 3, kind: output, shape index: {}]  }
   0x1   :  { %10 = vsyncpa [#allocation3 + $0x1], 0  ;;  %s3522_s12 = smov 0   ;;  %s3524_s13 = smov 0  }
   0x2   :  { %s3526_s14 = smov 0   ;;  %s3528_s15 = smov 0  }
   0x3   :  { %s3530_s16 = smov 0   ;;  %s3532_s17 = smov 0  }
   0x4   :  { %s3534_s18 = smov 0   ;;  %s3536_s19 = smov 0  }
   0x5 LB: > { %s2919_s20 = sadd.s32 4294967295, %s3496_s19   ;;  %s2920_s21 = sadd.s32 4294967294, %s3496_s19   ;;  %s3496_s19 = sphi %s3536_s19, %s16_s19   ;;  %s3492_s18 = sphi %s3534_s18, %s5103_s18   ;;  %s3488_s17 = sphi %s3532_s17, %s5102_s17   ;;  %s3484_s16 = sphi %s3530_s16, %s5101_s16   ;;  %s3480_s15 = sphi %s3528_s15, %s5100_s15   ;;  %s3476_s14 = sphi %s3526_s14, %s5099_s14   ;;  %s3472_s13 = sphi %s3524_s13, %s5098_s13   ;;  %s3468_s12 = sphi %s3522_s12, %s5097_s12  }
   0x6   : > { %s25_s22 = sadd.s32 1, %s3488_s17  ;;  %s28_s23 = sadd.s32 1, %s3492_s18 }
   0x7   : > { %p26_p0 = scmp.ge.s32.totalorder %s25_s22, 2  ;;  %p120_p1 = scmp.ne.s32.totalorder %s3476_s14, %s3472_s13 }
   0x8   : > { %p121_p2 = scmp.eq.s32.totalorder %s2919_s20, 3  ;;  %p126_p5 = scmp.ne.s32.totalorder %s3472_s13, %s3468_s12 }
   0x9   : > { %s5105_s22 = smov (%p26_p0, %s25_s22), 0  ;;  %s5107_s23 = smov (!%p26_p0, %s28_s23), %s3492_s18 }
   0xa   : > { %s106_s24 = ssub.s32 %s3488_s17, %s5105_s22  ;;  %p3573_p3 = por %p121_p2, %p120_p1 }
   0xb   : > { %p30_p4 = scmp.ge.s32.totalorder %s5107_s23, 2  ;;  %p127_p6 = scmp.eq.s32.totalorder %s2920_s21, 3 }
   0xc   : > { %p2923_p7 = scmp.ge.s32.totalorder %s3496_s19, 1  ;;  %p164_p9 = scmp.lt.s32.totalorder %s3496_s19, 5 }
   0xd   : > { %s5109_s23 = smov (%p30_p4, %s5107_s23), 0  ;;  %p3582_p8 = por %p127_p6, %p126_p5 }
   0xe   : > { %s105_s27 = ssub.s32 %s3492_s18, %s5109_s23  ;;  %s110_s28 = sadd.s32 1, %s3476_s14 }
   0xf   : > { %s107_s29 = sor.u32 %s106_s24, %s105_s27  ;;  %p165_p10 = pnand %p2923_p7, %p164_p9 }
  0x10   : > { %p108_p11 = scmp.eq.s32.totalorder %s107_s29, 0 }
  0x11   : > { %168 = sbr.rel (%p165_p10) target bundleno = 921 (0x399), region = 32 }
  0x12   : > { %s3591_s30 = scalar_select %p108_p11, %s3476_s14, %s110_s28  }
  0x18   : > { %p193_p12 = scmp.lt.s32.totalorder %s3484_s16, 1  ;;  %s3595_s4 = sshll.u32 %s3480_s15, 3  ;;  %vm216_vm0 = vcmask 1041408   ;;  %vm226_vm1 = vcmask 1043456   ;;  %v237_v12 = vld [vmem:[%s5083_s2] sm:$0xff]  ;;  %vm301_vm2 = vcmask 244736  }
  0x19   : > { %p204_p13 = scmp.lt.s32.totalorder %s3595_s4, 6  ;;  %3078 = vmatprep.mubr.msk.f32.mxu0 %vm301_vm2, %v237_v12  ;;  %v269_v15 = vld [vmem:[%s5083_s2 + $0x100] sm:$0xff]  ;;  %vm494_vm3 = vcmask 1045504   ;;  %vm3500_vm4 = vmmov 1   ;;  %v238_v26 = vld [vmem:[%s5083_s2 + $0x8] sm:$0xff]  ;;  %v239_v28 = vld [vmem:[%s5083_s2 + $0x10] sm:$0xff] }
  0x1a   : > { %s194_s5 = scalar_select %p193_p12, %s3484_s16, 1  ;;  %3126 = vmatprep.mubr.msk.f32.mxu1 %vm301_vm2, %v269_v15  ;;  %vm3179_vm5 = vmpackc.low %vm494_vm3, %vm3500_vm4  ;;  %v270_v27 = vld [vmem:[%s5083_s2 + $0x108] sm:$0xff]  ;;  %v271_v29 = vld [vmem:[%s5083_s2 + $0x110] sm:$0xff]  ;;  %vm1458_vm7 = vcmask 113664  }
  0x1b   : > { %s3600_s6 = scalar_select %p204_p13, %s3595_s4, 6  ;;  %v240_v30 = vld [vmem:[%s5083_s2 + $0x18] sm:$0xff]  ;;  %v241_v32 = vld [vmem:[%s5083_s2 + $0x20] sm:$0xff]  ;;  %v242_v34 = vld [vmem:[%s5083_s2 + $0x28] sm:$0xff] }
  0x1c   : > { %s3000_s7 = sshll.u32 %s194_s5, 4  ;;  %s3498_s5 = smov 127   ;;  %v272_v31 = vld [vmem:[%s5083_s2 + $0x118] sm:$0xff]  ;;  %v273_v33 = vld [vmem:[%s5083_s2 + $0x120] sm:$0xff]  ;;  %v274_v35 = vld [vmem:[%s5083_s2 + $0x128] sm:$0xff] }
  0x1d   : > { %s197_s10 = scalar_lea.vmem %s5081_s0, %s3000_s7  ;;  %s202_s21 = scalar_lea.vmem %s5082_s1, %s3000_s7  ;;  %v243_v36 = vld [vmem:[%s5083_s2 + $0x30] sm:$0xff]  ;;  %v244_v38 = vld [vmem:[%s5083_s2 + $0x38] sm:$0xff]  ;;  %v245_v40 = vld [vmem:[%s5083_s2 + $0x40] sm:$0xff] }
  0x1e   : > { %s206_s24 = scalar_lea.vmem %s197_s10, %s3600_s6  ;;  %s209_s27 = scalar_lea.vmem %s202_s21, %s3600_s6  ;;  %v275_v37 = vld [vmem:[%s5083_s2 + $0x130] sm:$0xff]  ;;  %v276_v39 = vld [vmem:[%s5083_s2 + $0x138] sm:$0xff]  ;;  %v277_v41 = vld [vmem:[%s5083_s2 + $0x140] sm:$0xff] }
  0x1f   : > { %v207_v0 = vld [vmem:[%s206_s24] sm:$0xff]  ;;  %v208_v1 = vld [vmem:[%s206_s24 + $0x8] sm:$0x3]  ;;  %s3499_s7 = smov 126   ;;  %v247_v44 = vld [vmem:[%s5083_s2 + $0x50] sm:$0xff]  ;;  %s2996_s24 = sshll.u32 %s3484_s16, 1 }
  0x20   : > { %v210_v2 = vld [vmem:[%s209_s27] sm:$0xff]  ;;  %v211_v3 = vld [vmem:[%s209_s27 + $0x8] sm:$0x3]  ;;  %v279_v45 = vld [vmem:[%s5083_s2 + $0x150] sm:$0xff]  ;;  %s2829_s27 = sadd.s32 %s3480_s15, %s2996_s24  ;;  %s3501_s15 = smov [#allocation2]  }
  0x21   : > { %v212_v4 = vsub.f32 %v207_v0, %v210_v2  ;;  %v213_v5 = vsub.f32 %v208_v1, %v211_v3  ;;  %v246_v42 = vld [vmem:[%s5083_s2 + $0x48] sm:$0xff]  ;;  %v248_v46 = vld [vmem:[%s5083_s2 + $0x58] sm:$0xff]  ;;  %v249_v48 = vld [vmem:[%s5083_s2 + $0x60] sm:$0xff]  ;;  %s3406_s16 = sshll.u32 %s3501_s15, 4  ;;  %s3407_s16 = int_to_ptr.vmem [resolvable:$false] %s3406_s16 }
  0x22   : > { %v278_v43 = vld [vmem:[%s5083_s2 + $0x148] sm:$0xff]  ;;  %v280_v47 = vld [vmem:[%s5083_s2 + $0x158] sm:$0xff]  ;;  %v281_v49 = vld [vmem:[%s5083_s2 + $0x160] sm:$0xff]  ;;  %s3408_s21 = scalar_lea.vmem %s3407_s16, 256 }
  0x23   : > { %v217_v6 = vrot.slane %v212_v4, 6  ;;  %v227_v7 = vrot.slane %v212_v4, 4  ;;  %v218_v8 = vrot.slane %v213_v5, 6  ;;  %v228_v9 = vrot.slane %v213_v5, 4  ;;  %v250_v50 = vld [vmem:[%s5083_s2 + $0x68] sm:$0xff]  ;;  %v251_v52 = vld [vmem:[%s5083_s2 + $0x70] sm:$0xff] }
  0x24   : > { %v282_v51 = vld [vmem:[%s5083_s2 + $0x168] sm:$0xff]  ;;  %v283_v53 = vld [vmem:[%s5083_s2 + $0x170] sm:$0xff]  ;;  %v252_v54 = vld [vmem:[%s5083_s2 + $0x78] sm:$0xff] }
  0x25   : > { %v219_v10 = vsel %vm216_vm0, %v217_v6, %v218_v8  ;;  %v229_v11 = vsel %vm226_vm1, %v227_v7, %v228_v9  ;;  %v284_v55 = vld [vmem:[%s5083_s2 + $0x178] sm:$0xff]  ;;  %v253_v56 = vld [vmem:[%s5083_s2 + $0x80] sm:$0xff]  ;;  %v254_v58 = vld [vmem:[%s5083_s2 + $0x88] sm:$0xff] }
  0x26   : > { %v3264_v13 = vpack.i.bf16 %v219_v10, %v217_v6  ;;  %v3269_v14 = vpack.i.bf16 %v229_v11, %v227_v7  ;;  %v285_v57 = vld [vmem:[%s5083_s2 + $0x180] sm:$0xff]  ;;  %v286_v59 = vld [vmem:[%s5083_s2 + $0x188] sm:$0xff]  ;;  %v255_v60 = vld [vmem:[%s5083_s2 + $0x90] sm:$0xff] }
  0x27   : > { %v287_v61 = vld [vmem:[%s5083_s2 + $0x190] sm:$0xff]  ;;  %v256_v62 = vld [vmem:[%s5083_s2 + $0x98] sm:$0xff]  ;;  %v257_v0 = vld [vmem:[%s5083_s2 + $0xa0] sm:$0xff] }
  0x28   : > { %3265 = vrot.lane.b32.xlu0 %v3264_v13, %s3498_s5  ;;  %v288_v63 = vld [vmem:[%s5083_s2 + $0x198] sm:$0xff]  ;;  %v289_v1 = vld [vmem:[%s5083_s2 + $0x1a0] sm:$0xff]  ;;  %v258_v2 = vld [vmem:[%s5083_s2 + $0xa8] sm:$0xff]  ;;  %s2997_s5 = sshll.u32 %s2829_s27, 7 }
  0x29   : > { %v290_v3 = vld [vmem:[%s5083_s2 + $0x1a8] sm:$0xff]  ;;  %v260_v6 = vld [vmem:[%s5083_s2 + $0xb8] sm:$0xff]  ;;  %v261_v8 = vld [vmem:[%s5083_s2 + $0xc0] sm:$0xff]  ;;  %s5030_s10 = scalar_lea.hbm %s5084_s3, %s2997_s5 }
  0x2a   : > { %v292_v7 = vld [vmem:[%s5083_s2 + $0x1b8] sm:$0xff]  ;;  %v293_v9 = vld [vmem:[%s5083_s2 + $0x1c0] sm:$0xff]  ;;  %v262_v10 = vld [vmem:[%s5083_s2 + $0xc8] sm:$0xff] }
  0x2b   : > { %v294_v11 = vld [vmem:[%s5083_s2 + $0x1c8] sm:$0xff]  ;;  %v263_v12 = vld [vmem:[%s5083_s2 + $0xd0] sm:$0xff]  ;;  %v296_v15 = vld [vmem:[%s5083_s2 + $0x1d8] sm:$0xff] }
  0x2c   : > { %3270 = vrot.lane.b32.xlu0 %v3269_v14, %s3499_s7  ;;  %v295_v13 = vld [vmem:[%s5083_s2 + $0x1d0] sm:$0xff]  ;;  %v264_v14 = vld [vmem:[%s5083_s2 + $0xd8] sm:$0xff] }
  0x9a   : > { %v3266_v16 = vpop.permute.xlu0 %3265 }
  0x9b   : > { %v3267_v17 = vunpack.i.l.bf16 %v3266_v16  ;;  %v3268_v21 = vunpack.i.h.bf16 %v3266_v16  ;;  %v265_v16 = vld [vmem:[%s5083_s2 + $0xe0] sm:$0xff] }
  0x9d   : > { %v235_v18 = vsel %vm216_vm0, %v213_v5, %v3267_v17  ;;  %v291_v5 = vld [vmem:[%s5083_s2 + $0x1b0] sm:$0xff]  ;;  %v297_v17 = vld [vmem:[%s5083_s2 + $0x1e0] sm:$0xff] }
  0x9e   : > { %v3174_v19 = vpack.c.bf16 %v235_v18, %v212_v4  ;;  %v3271_v20 = vpop.permute.xlu0 %3270  ;;  %v259_v4 = vld [vmem:[%s5083_s2 + $0xb0] sm:$0xff]  ;;  %v266_v18 = vld [vmem:[%s5083_s2 + $0xe8] sm:$0xff] }
  0x9f   : > { %v3273_v22 = vunpack.i.h.bf16 %v3271_v20  ;;  %v3272_v23 = vunpack.i.l.bf16 %v3271_v20  ;;  %v267_v20 = vld [vmem:[%s5083_s2 + $0xf0] sm:$0xff] }
  0xa0   : > { %3175 = vmatprep.subr.bf16.mxu0 %v3174_v19  ;;  %3184 = vmatprep.subr.bf16.mxu1 %v3174_v19 }
  0xa1   : > { %v236_v24 = vsel %vm226_vm1, %v3268_v21, %v3272_v23  ;;  %3177 = vmatpush3.bf16.msra.mxu0 %v3174_v19  ;;  %3186 = vmatpush3.bf16.msra.mxu1 %v3174_v19  ;;  %v298_v19 = vld [vmem:[%s5083_s2 + $0x1e8] sm:$0xff]  ;;  %v299_v21 = vld [vmem:[%s5083_s2 + $0x1f0] sm:$0xff]  ;;  %v300_v23 = vld [vmem:[%s5083_s2 + $0x1f8] sm:$0xff] }
  0xa2   : > { %v3178_v25 = vpack.c.bf16 %v3273_v22, %v236_v24  ;;  %v268_v22 = vld [vmem:[%s5083_s2 + $0xf8] sm:$0xff] }
  0xa4   : > { %3180 = vmatprep.subr.msk.bf16.mxu0 %vm3179_vm5, %v3178_v25  ;;  %3185 = vmatprep.subr.msk.bf16.mxu1 %vm3179_vm5, %v3178_v25 }
  0xa5   : > { %3183 = vmatpush3.bf16.msk.msra.mxu0 %vm3179_vm5, %v3178_v25  ;;  %3187 = vmatpush3.bf16.msk.msra.mxu1 %vm3179_vm5, %v3178_v25 }
  0xa8   : > { %3079 = vmatmul.mubr.msk.f32.vlgmr.msra.gmra.mrb[0].mxu0 %vm301_vm2, %v238_v26  ;;  %3127 = vmatmul.mubr.msk.f32.vlgmr.msra.gmra.mrb[0].mxu1 %vm301_vm2, %v270_v27 }
  0xa9   : > { %3081 = vmatprep.mubr.msk.f32.mxu0 %vm301_vm2, %v239_v28  ;;  %3129 = vmatprep.mubr.msk.f32.mxu1 %vm301_vm2, %v271_v29 }
  0xac   : > { %3082 = vmatmul.mubr.msk.f32.gmra.mrb[2].mxu0 %vm301_vm2, %v240_v30  ;;  %3130 = vmatmul.mubr.msk.f32.gmra.mrb[2].mxu1 %vm301_vm2, %v272_v31 }
  0xad   : > { %3084 = vmatprep.mubr.msk.f32.mxu0 %vm301_vm2, %v241_v32  ;;  %3132 = vmatprep.mubr.msk.f32.mxu1 %vm301_vm2, %v273_v33 }
  0xb0   : > { %3085 = vmatmul.mubr.msk.f32.gmra.mrb[4].mxu0 %vm301_vm2, %v242_v34  ;;  %3133 = vmatmul.mubr.msk.f32.gmra.mrb[4].mxu1 %vm301_vm2, %v274_v35 }
  0xb1   : > { %3087 = vmatprep.mubr.msk.f32.mxu0 %vm301_vm2, %v243_v36  ;;  %3135 = vmatprep.mubr.msk.f32.mxu1 %vm301_vm2, %v275_v37 }
  0xb4   : > { %3088 = vmatmul.mubr.msk.f32.gmra.mrb[6].mxu0 %vm301_vm2, %v244_v38  ;;  %3136 = vmatmul.mubr.msk.f32.gmra.mrb[6].mxu1 %vm301_vm2, %v276_v39 }
  0xb5   : > { %3090 = vmatprep.mubr.msk.f32.mxu0 %vm301_vm2, %v245_v40  ;;  %3138 = vmatprep.mubr.msk.f32.mxu1 %vm301_vm2, %v277_v41 }
  0xb8   : > { %3091 = vmatmul.mubr.msk.f32.gmra.mrb[8].mxu0 %vm301_vm2, %v246_v42  ;;  %3139 = vmatmul.mubr.msk.f32.gmra.mrb[8].mxu1 %vm301_vm2, %v278_v43 }
  0xb9   : > { %3093 = vmatprep.mubr.msk.f32.mxu0 %vm301_vm2, %v247_v44  ;;  %3141 = vmatprep.mubr.msk.f32.mxu1 %vm301_vm2, %v279_v45 }
  0xbc   : > { %3094 = vmatmul.mubr.msk.f32.gmra.mrb[10].mxu0 %vm301_vm2, %v248_v46  ;;  %3142 = vmatmul.mubr.msk.f32.gmra.mrb[10].mxu1 %vm301_vm2, %v280_v47 }
  0xbd   : > { %3096 = vmatprep.mubr.msk.f32.mxu0 %vm301_vm2, %v249_v48  ;;  %3144 = vmatprep.mubr.msk.f32.mxu1 %vm301_vm2, %v281_v49 }
  0xc0   : > { %3097 = vmatmul.mubr.msk.f32.gmra.mrb[12].mxu0 %vm301_vm2, %v250_v50  ;;  %3145 = vmatmul.mubr.msk.f32.gmra.mrb[12].mxu1 %vm301_vm2, %v282_v51 }
  0xc1   : > { %3099 = vmatprep.mubr.msk.f32.mxu0 %vm301_vm2, %v251_v52  ;;  %3147 = vmatprep.mubr.msk.f32.mxu1 %vm301_vm2, %v283_v53 }
  0xc4   : > { %3100 = vmatmul.mubr.msk.f32.gmra.mrb[14].mxu0 %vm301_vm2, %v252_v54  ;;  %3148 = vmatmul.mubr.msk.f32.gmra.mrb[14].mxu1 %vm301_vm2, %v284_v55 }
  0xc5   : > { %3102 = vmatprep.mubr.msk.f32.mxu0 %vm301_vm2, %v253_v56  ;;  %3150 = vmatprep.mubr.msk.f32.mxu1 %vm301_vm2, %v285_v57 }
  0xc8   : > { %3103 = vmatmul.mubr.msk.f32.gmra.mrb[16].mxu0 %vm301_vm2, %v254_v58  ;;  %3151 = vmatmul.mubr.msk.f32.gmra.mrb[16].mxu1 %vm301_vm2, %v286_v59 }
  0xc9   : > { %3105 = vmatprep.mubr.msk.f32.mxu0 %vm301_vm2, %v255_v60  ;;  %3153 = vmatprep.mubr.msk.f32.mxu1 %vm301_vm2, %v287_v61 }
  0xcc   : > { %3106 = vmatmul.mubr.msk.f32.gmra.mrb[18].mxu0 %vm301_vm2, %v256_v62  ;;  %3154 = vmatmul.mubr.msk.f32.gmra.mrb[18].mxu1 %vm301_vm2, %v288_v63 }
  0xcd   : > { %3108 = vmatprep.mubr.msk.f32.mxu0 %vm301_vm2, %v257_v0  ;;  %3156 = vmatprep.mubr.msk.f32.mxu1 %vm301_vm2, %v289_v1 }
  0xd0   : > { %3109 = vmatmul.mubr.msk.f32.gmra.mrb[20].mxu0 %vm301_vm2, %v258_v2  ;;  %3157 = vmatmul.mubr.msk.f32.gmra.mrb[20].mxu1 %vm301_vm2, %v290_v3 }
  0xd1   : > { %3111 = vmatprep.mubr.msk.f32.mxu0 %vm301_vm2, %v259_v4  ;;  %3159 = vmatprep.mubr.msk.f32.mxu1 %vm301_vm2, %v291_v5 }
  0xd4   : > { %3112 = vmatmul.mubr.msk.f32.gmra.mrb[22].mxu0 %vm301_vm2, %v260_v6  ;;  %3160 = vmatmul.mubr.msk.f32.gmra.mrb[22].mxu1 %vm301_vm2, %v292_v7 }
  0xd5   : > { %3114 = vmatprep.mubr.msk.f32.mxu0 %vm301_vm2, %v261_v8  ;;  %3162 = vmatprep.mubr.msk.f32.mxu1 %vm301_vm2, %v293_v9 }
  0xd8   : > { %3115 = vmatmul.mubr.msk.f32.gmra.mrb[24].mxu0 %vm301_vm2, %v262_v10  ;;  %3163 = vmatmul.mubr.msk.f32.gmra.mrb[24].mxu1 %vm301_vm2, %v294_v11 }
  0xd9   : > { %3117 = vmatprep.mubr.msk.f32.mxu0 %vm301_vm2, %v263_v12  ;;  %3165 = vmatprep.mubr.msk.f32.mxu1 %vm301_vm2, %v295_v13 }
  0xdc   : > { %3118 = vmatmul.mubr.msk.f32.gmra.mrb[26].mxu0 %vm301_vm2, %v264_v14  ;;  %3166 = vmatmul.mubr.msk.f32.gmra.mrb[26].mxu1 %vm301_vm2, %v296_v15 }
  0xdd   : > { %3120 = vmatprep.mubr.msk.f32.mxu0 %vm301_vm2, %v265_v16  ;;  %3168 = vmatprep.mubr.msk.f32.mxu1 %vm301_vm2, %v297_v17 }
  0xe0   : > { %3121 = vmatmul.mubr.msk.f32.gmra.mrb[28].mxu0 %vm301_vm2, %v266_v18  ;;  %3169 = vmatmul.mubr.msk.f32.gmra.mrb[28].mxu1 %vm301_vm2, %v298_v19 }
  0xe1   : > { %3123 = vmatprep.mubr.msk.f32.mxu0 %vm301_vm2, %v267_v20  ;;  %3171 = vmatprep.mubr.msk.f32.mxu1 %vm301_vm2, %v299_v21 }
  0xe4   : > { %3124 = vmatmul.mubr.msk.f32.gmra.mrb[30].mxu0 %vm301_vm2, %v268_v22  ;;  %3172 = vmatmul.mubr.msk.f32.gmra.mrb[30].mxu1 %vm301_vm2, %v300_v23 }
 0x17b   : > { %v3080_v24 = vpop.f32.mrb[0].mxu0  ;;  %v3128_v25 = vpop.f32.mrb[0].mxu1 }
 0x17c   : > { %v883_v26 = vmul.f32 %v3080_v24, %v3080_v24  ;;  %v563_v27 = vpop.f32.mrb[1].mxu0  ;;  %v723_v28 = vpop.f32.mrb[1].mxu1  ;;  %v915_v31 = vmul.f32 %v3128_v25, %v3128_v25 }
 0x17d   : > { %v882_v29 = vmul.f32 %v563_v27, %v563_v27  ;;  %v914_v34 = vmul.f32 %v723_v28, %v723_v28 }
 0x17e   : > { %v3870_v30 = vadd.f32 1e-06, %v883_v26  ;;  %v3878_v41 = vadd.f32 1e-06, %v915_v31 }
 0x17f   : > { %v3872_v32 = vadd.f32 1e-06, %v882_v29  ;;  %v3083_v33 = vpop.f32.mrb[2].mxu0  ;;  %v3131_v35 = vpop.f32.mrb[2].mxu1  ;;  %v3882_v44 = vadd.f32 1e-06, %v914_v34 }
 0x180   : > { %v885_v36 = vmul.f32 %v3083_v33, %v3083_v33  ;;  %v573_v37 = vpop.f32.mrb[3].mxu0  ;;  %3274 = vrsqrt.f32 %v3870_v30  ;;  %v733_v38 = vpop.f32.mrb[3].mxu1  ;;  %v917_v45 = vmul.f32 %v3131_v35, %v3131_v35  ;;  %vm1019_vm6 = vcmp.eq.f32.partialorder %v3870_v30, inf }
 0x181   : > { %3276 = vrsqrt.f32 %v3872_v32  ;;  %v884_v39 = vmul.f32 %v573_v37, %v573_v37  ;;  %v916_v46 = vmul.f32 %v733_v38, %v733_v38  ;;  %vm1021_vm8 = vcmp.eq.f32.partialorder %v3870_v30, 0.0 }
 0x182   : > { %v3876_v40 = vadd.f32 1e-06, %v885_v36  ;;  %v1022_v52 = vand.u32 2147483648, %v3870_v30  ;;  %vm1012_vm9 = vcmp.eq.f32.partialorder %v3872_v32, inf  ;;  %vm1014_vm10 = vcmp.eq.f32.partialorder %v3872_v32, 0.0 }
 0x183   : > { %v3880_v42 = vadd.f32 1e-06, %v884_v39  ;;  %v3086_v43 = vpop.f32.mrb[4].mxu0  ;;  %v3134_v47 = vpop.f32.mrb[4].mxu1  ;;  %v3894_v54 = vadd.f32 1e-06, %v917_v45 }
 0x184   : > { %3278 = vrsqrt.f32 %v3876_v40  ;;  %v887_v48 = vmul.f32 %v3086_v43, %v3086_v43  ;;  %v583_v49 = vpop.f32.mrb[5].mxu0  ;;  %v743_v50 = vpop.f32.mrb[5].mxu1  ;;  %v3899_v57 = vadd.f32 1e-06, %v916_v46  ;;  %v1015_v61 = vand.u32 2147483648, %v3872_v32 }
 0x185   : > { %3280 = vrsqrt.f32 %v3880_v42  ;;  %v886_v51 = vmul.f32 %v583_v49, %v583_v49  ;;  %vm1033_vm11 = vcmp.eq.f32.partialorder %v3876_v40, inf  ;;  %vm1026_vm12 = vcmp.eq.f32.partialorder %v3880_v42, inf }
 0x186   : > { %v3890_v53 = vadd.f32 1e-06, %v887_v48  ;;  %3282 = vrsqrt.f32 %v3878_v41  ;;  %v1029_v0 = vand.u32 2147483648, %v3880_v42  ;;  %vm1035_vm13 = vcmp.eq.f32.partialorder %v3876_v40, 0.0 }
 0x187   : > { %v3896_v55 = vadd.f32 1e-06, %v886_v51  ;;  %v3089_v56 = vpop.f32.mrb[6].mxu0  ;;  %3284 = vrsqrt.f32 %v3882_v44  ;;  %v3901_v58 = vpop.f32.mrb[6].mxu1  ;;  %vm1028_vm14 = vcmp.eq.f32.partialorder %v3880_v42, 0.0  ;;  %v1036_v3 = vand.u32 2147483648, %v3876_v40 }
 0x188   : > { %3286 = vrsqrt.f32 %v3890_v53  ;;  %v889_v59 = vmul.f32 %v3089_v56, %v3089_v56  ;;  %v593_v60 = vpop.f32.mrb[7].mxu0  ;;  %v3906_v62 = vpop.f32.mrb[7].mxu1  ;;  %v919_v4 = vmul.f32 %v3134_v47, %v3134_v47  ;;  %v3921_v9 = vmul.f32 %v743_v50, %v743_v50 }
 0x189   : > { %3288 = vrsqrt.f32 %v3896_v55  ;;  %v888_v63 = vmul.f32 %v593_v60, %v593_v60  ;;  %vm1047_vm15 = vcmp.eq.f32.partialorder %v3890_v53, inf  ;;  %v1050_v14 = vand.u32 2147483648, %v3890_v53 }
 0x18a   : > { %v3275_v1 = vpop.eup %3274  ;;  %v3912_v2 = vadd.f32 1e-06, %v889_v59  ;;  %3290 = vrsqrt.f32 %v3894_v54  ;;  %vm1049_vm0 = vcmp.eq.f32.partialorder %v3890_v53, 0.0  ;;  %vm1040_vm1 = vcmp.eq.f32.partialorder %v3896_v55, inf }
 0x18b   : > { %v3277_v5 = vpop.eup %3276  ;;  %v3917_v6 = vadd.f32 1e-06, %v888_v63  ;;  %v3092_v7 = vpop.f32.mrb[8].mxu0  ;;  %v1018_v8 = vmul.f32 %v3275_v1, %v3870_v30  ;;  %3292 = vrsqrt.f32 %v3899_v57  ;;  %v1043_v18 = vand.u32 2147483648, %v3896_v55 }
 0x18c   : > { %v3923_v10 = vpop.f32.mrb[8].mxu1  ;;  %3294 = vrsqrt.f32 %v3912_v2  ;;  %v891_v11 = vmul.f32 %v3092_v7, %v3092_v7  ;;  %v603_v12 = vpop.f32.mrb[9].mxu0  ;;  %v1011_v13 = vmul.f32 %v3277_v5, %v3872_v32  ;;  %vm1042_vm2 = vcmp.eq.f32.partialorder %v3896_v55, 0.0 }
 0x18d   : > { %v3929_v15 = vpop.f32.mrb[9].mxu1  ;;  %3296 = vrsqrt.f32 %v3917_v6  ;;  %v890_v16 = vmul.f32 %v603_v12, %v603_v12  ;;  %v1020_v17 = vsel %vm1019_vm6, %v3870_v30, %v1018_v8  ;;  %v3946_v23 = vadd.f32 1e-06, %v919_v4 }
 0x18e   : > { %v3279_v19 = vpop.eup %3278  ;;  %v3938_v20 = vadd.f32 1e-06, %v891_v11  ;;  %v1023_v21 = vsel %vm1021_vm8, %v1022_v52, %v1020_v17  ;;  %v1013_v22 = vsel %vm1012_vm9, %v3872_v32, %v1011_v13  ;;  %vm1061_vm3 = vcmp.eq.f32.partialorder %v3912_v2, inf }
 0x18f   : > { %v3281_v24 = vpop.eup %3280  ;;  %v3948_v25 = vadd.f32 1e-06, %v890_v16  ;;  %v1462_v26 = vsel %vm1458_vm7, %v1023_v21, 0.0  ;;  %v3095_v27 = vpop.f32.mrb[10].mxu0  ;;  %v1016_v28 = vsel %vm1014_vm10, %v1015_v61, %v1013_v22  ;;  %v1032_v29 = vmul.f32 %v3279_v19, %v3876_v40 }
 0x190   : > { %v3954_v30 = vpop.f32.mrb[10].mxu1  ;;  %v3956_v31 = vpop.eup %3282  ;;  %3298 = vrsqrt.f32 %v3938_v20  ;;  %1463 = vadd.xlane.f32.xlu1 %v1462_v26  ;;  %v893_v33 = vmul.f32 %v3095_v27, %v3095_v27  ;;  %v1025_v35 = vmul.f32 %v3281_v24, %v3880_v42  ;;  %v1064_v36 = vand.u32 2147483648, %v3912_v2 }
 0x191   : > { %v613_v34 = vpop.f32.mrb[11].mxu0  ;;  %v3962_v37 = vpop.f32.mrb[11].mxu1  ;;  %3300 = vrsqrt.f32 %v3948_v25  ;;  %v1459_v39 = vsel %vm1458_vm7, %v1016_v28, 0.0  ;;  %v1034_v43 = vsel %vm1033_vm11, %v3876_v40, %v1032_v29  ;;  %vm1063_vm4 = vcmp.eq.f32.partialorder %v3912_v2, 0.0 }
 0x192   : > { %v3964_v32 = vpop.eup %3284  ;;  %v892_v38 = vmul.f32 %v613_v34, %v613_v34  ;;  %v3972_v46 = vadd.f32 1e-06, %v893_v33  ;;  %v1027_v47 = vsel %vm1026_vm12, %v3880_v42, %v1025_v35  ;;  %v1037_v48 = vsel %vm1035_vm13, %v1036_v3, %v1034_v43 }
 0x193   : > { %v3287_v45 = vpop.eup %3286  ;;  %vm1054_vm5 = vcmp.eq.f32.partialorder %v3917_v6, inf  ;;  %v3098_v51 = vpop.f32.mrb[12].mxu0  ;;  %v1030_v52 = vsel %vm1028_vm14, %v1029_v0, %v1027_v47  ;;  %vm1056_vm6 = vcmp.eq.f32.partialorder %v3917_v6, 0.0  ;;  %v1468_v4 = vsel %vm1458_vm7, %v1037_v48, 0.0 }
 0x194   : > { %v3289_v49 = vpop.eup %3288  ;;  %v3980_v50 = vadd.f32 1e-06, %v892_v38  ;;  %v1046_v56 = vmul.f32 %v3287_v45, %v3890_v53  ;;  %v3988_v59 = vpop.f32.mrb[12].mxu1  ;;  %3302 = vrsqrt.f32 %v3972_v46  ;;  %1460 = vadd.xlane.f32.xlu1 %v1459_v39  ;;  %v895_v40 = vmul.f32 %v3098_v51, %v3098_v51 }
 0x195   : > { %v3990_v60 = vpop.eup %3290  ;;  %v1465_v61 = vsel %vm1458_vm7, %v1030_v52, 0.0  ;;  %v623_v63 = vpop.f32.mrb[13].mxu0  ;;  %v1039_v1 = vmul.f32 %v3289_v49, %v3896_v55  ;;  %vm1089_vm8 = vcmp.eq.f32.partialorder %v3972_v46, inf  ;;  %vm1091_vm9 = vcmp.eq.f32.partialorder %v3972_v46, 0.0 }
 0x196   : > { %v3995_v3 = vpop.f32.mrb[13].mxu1  ;;  %v3997_v42 = vpop.eup %3292  ;;  %3304 = vrsqrt.f32 %v3980_v50  ;;  %1466 = vadd.xlane.f32.xlu0 %v1465_v61  ;;  %v894_v0 = vmul.f32 %v623_v63, %v623_v63  ;;  %v1048_v5 = vsel %vm1047_vm15, %v3890_v53, %v1046_v56  ;;  %v4004_v8 = vadd.f32 1e-06, %v895_v40 }
 0x197   : > { %v3295_v7 = vpop.eup %3294  ;;  %v1051_v11 = vsel %vm1049_vm0, %v1050_v14, %v1048_v5  ;;  %v1041_v12 = vsel %vm1040_vm1, %v3896_v55, %v1039_v1  ;;  %v3101_v17 = vpop.f32.mrb[14].mxu0  ;;  %v1092_v27 = vand.u32 2147483648, %v3972_v46  ;;  %v1057_v38 = vand.u32 2147483648, %v3917_v6 }
 0x198   : > { %v3297_v13 = vpop.eup %3296  ;;  %v4014_v16 = vadd.f32 1e-06, %v894_v0  ;;  %v1474_v19 = vsel %vm1458_vm7, %v1051_v11, 0.0  ;;  %v1044_v21 = vsel %vm1042_vm2, %v1043_v18, %v1041_v12  ;;  %v1060_v53 = vmul.f32 %v3295_v7, %v3912_v2  ;;  %v4023_v14 = vpop.f32.mrb[14].mxu1  ;;  %1469 = vadd.xlane.f32.xlu1 %v1468_v4 }
 0x199   : > { %3306 = vrsqrt.f32 %v4004_v8  ;;  %v897_v22 = vmul.f32 %v3101_v17, %v3101_v17  ;;  %v633_v24 = vpop.f32.mrb[15].mxu0  ;;  %v1471_v26 = vsel %vm1458_vm7, %v1044_v21, 0.0  ;;  %v4028_v28 = vpop.f32.mrb[15].mxu1  ;;  %v1053_v29 = vmul.f32 %v3297_v13, %v3917_v6 }
 0x19a   : > { %3308 = vrsqrt.f32 %v4014_v16  ;;  %v896_v55 = vmul.f32 %v633_v24, %v633_v24  ;;  %v1062_v18 = vsel %vm1061_vm3, %v3912_v2, %v1060_v53  ;;  %v3299_v33 = vpop.eup %3298  ;;  %vm1103_vm10 = vcmp.eq.f32.partialorder %v4004_v8, inf }
 0x19b   : > { %v4035_v34 = vadd.f32 1e-06, %v897_v22  ;;  %v1065_v35 = vsel %vm1063_vm4, %v1064_v36, %v1062_v18  ;;  %v3301_v39 = vpop.eup %3300  ;;  %v3104_v45 = vpop.f32.mrb[16].mxu0  ;;  %v1055_v48 = vsel %vm1054_vm5, %v3917_v6, %v1053_v29  ;;  %vm1105_vm11 = vcmp.eq.f32.partialorder %v4004_v8, 0.0 }
 0x19c   : > { %v4041_v43 = vadd.f32 1e-06, %v896_v55  ;;  %v1480_v47 = vsel %vm1458_vm7, %v1065_v35, 0.0  ;;  %v4048_v49 = vpop.f32.mrb[16].mxu1  ;;  %1475 = vadd.xlane.f32.xlu1 %v1474_v19  ;;  %v899_v2 = vmul.f32 %v3104_v45, %v3104_v45  ;;  %v643_v36 = vpop.f32.mrb[17].mxu0  ;;  %v1058_v51 = vsel %vm1056_vm6, %v1057_v38, %v1055_v48 }
 0x19d   : > { %3310 = vrsqrt.f32 %v4035_v34  ;;  %v1106_v52 = vand.u32 2147483648, %v4004_v8  ;;  %v4054_v56 = vpop.f32.mrb[17].mxu1  ;;  %v898_v40 = vmul.f32 %v643_v36, %v643_v36  ;;  %v1477_v61 = vsel %vm1458_vm7, %v1058_v51, 0.0 }
 0x19e   : > { %3312 = vrsqrt.f32 %v4041_v43  ;;  %v1074_v63 = vmul.f32 %v3299_v33, %v3938_v20  ;;  %v3303_v1 = vpop.eup %3302  ;;  %v4059_v0 = vadd.f32 1e-06, %v899_v2  ;;  %vm1075_vm12 = vcmp.eq.f32.partialorder %v3938_v20, inf }
 0x19f   : > { %vm1077_vm13 = vcmp.eq.f32.partialorder %v3938_v20, 0.0  ;;  %v1078_v6 = vand.u32 2147483648, %v3938_v20  ;;  %v4066_v5 = vadd.f32 1e-06, %v898_v40  ;;  %v3107_v7 = vpop.f32.mrb[18].mxu0  ;;  %v1088_v11 = vmul.f32 %v3303_v1, %v3972_v46  ;;  %v4071_v13 = vpop.f32.mrb[18].mxu1 }
 0x1a0   : > { %v4064_v4 = vpop.eup %3304  ;;  %v1076_v12 = vsel %vm1075_vm12, %v3938_v20, %v1074_v63  ;;  %vm1117_vm14 = vcmp.eq.f32.partialorder %v4035_v34, inf  ;;  %3314 = vrsqrt.f32 %v4059_v0  ;;  %1472 = vadd.xlane.f32.xlu1 %v1471_v26  ;;  %v901_v17 = vmul.f32 %v3107_v7, %v3107_v7  ;;  %v653_v19 = vpop.f32.mrb[19].mxu0 }
 0x1a1   : > { %v1079_v21 = vsel %vm1077_vm13, %v1078_v6, %v1076_v12  ;;  %vm1119_vm15 = vcmp.eq.f32.partialorder %v4035_v34, 0.0  ;;  %v4075_v53 = vpop.f32.mrb[19].mxu1  ;;  %3316 = vrsqrt.f32 %v4066_v5  ;;  %v900_v22 = vmul.f32 %v653_v19, %v653_v19 }
 0x1a2   : > { %v1090_v20 = vsel %vm1089_vm8, %v3972_v46, %v1088_v11  ;;  %v1486_v24 = vsel %vm1458_vm7, %v1079_v21, 0.0  ;;  %v4082_v18 = vadd.f32 1e-06, %v901_v17  ;;  %v1120_v29 = vand.u32 2147483648, %v4035_v34 }
 0x1a3   : > { %v3307_v55 = vpop.eup %3306  ;;  %v1093_v26 = vsel %vm1091_vm9, %v1092_v27, %v1090_v20  ;;  %v1067_v33 = vmul.f32 %v3301_v39, %v3948_v25  ;;  %v4090_v38 = vadd.f32 1e-06, %v900_v22  ;;  %v3110_v45 = vpop.f32.mrb[20].mxu0  ;;  %vm1068_vm0 = vcmp.eq.f32.partialorder %v3948_v25, inf }
 0x1a4   : > { %v4088_v35 = vpop.eup %3308  ;;  %v1492_v48 = vsel %vm1458_vm7, %v1093_v26, 0.0  ;;  %v1102_v2 = vmul.f32 %v3307_v55, %v4004_v8  ;;  %v4095_v36 = vpop.f32.mrb[20].mxu1  ;;  %3318 = vrsqrt.f32 %v4082_v18  ;;  %1481 = vadd.xlane.f32.xlu1 %v1480_v47  ;;  %v903_v46 = vmul.f32 %v3110_v45, %v3110_v45 }
 0x1a5   : > { %v663_v27 = vpop.f32.mrb[21].mxu0  ;;  %1493 = vadd.xlane.f32.xlu0 %v1492_v48  ;;  %v1069_v39 = vsel %vm1068_vm0, %v3948_v25, %v1067_v33  ;;  %vm1070_vm1 = vcmp.eq.f32.partialorder %v3948_v25, 0.0  ;;  %v4100_v51 = vpop.f32.mrb[21].mxu1  ;;  %3320 = vrsqrt.f32 %v4090_v38  ;;  %v1071_v1 = vand.u32 2147483648, %v3948_v25 }
 0x1a6   : > { %v902_v40 = vmul.f32 %v663_v27, %v663_v27  ;;  %v1104_v63 = vsel %vm1103_vm10, %v4004_v8, %v1102_v2  ;;  %v4107_v47 = vadd.f32 1e-06, %v903_v46  ;;  %vm1131_vm2 = vcmp.eq.f32.partialorder %v4059_v0, inf }
 0x1a7   : > { %v3311_v6 = vpop.eup %3310  ;;  %v1107_v7 = vsel %vm1105_vm11, %v1106_v52, %v1104_v63  ;;  %vm1133_vm3 = vcmp.eq.f32.partialorder %v4059_v0, 0.0  ;;  %v3113_v17 = vpop.f32.mrb[22].mxu0  ;;  %v1072_v22 = vsel %vm1070_vm1, %v1071_v1, %v1069_v39  ;;  %v1134_v26 = vand.u32 2147483648, %v4059_v0 }
 0x1a8   : > { %v4113_v11 = vpop.eup %3312  ;;  %v4115_v12 = vadd.f32 1e-06, %v902_v40  ;;  %v1498_v19 = vsel %vm1458_vm7, %v1107_v7, 0.0  ;;  %v1116_v21 = vmul.f32 %v3311_v6, %v4035_v34  ;;  %v4121_v20 = vpop.f32.mrb[22].mxu1  ;;  %3322 = vrsqrt.f32 %v4107_v47  ;;  %1478 = vadd.xlane.f32.xlu1 %v1477_v61 }
 0x1a9   : > { %v905_v8 = vmul.f32 %v3113_v17, %v3113_v17  ;;  %v673_v52 = vpop.f32.mrb[23].mxu0  ;;  %1499 = vadd.xlane.f32.xlu0 %v1498_v19  ;;  %v1483_v55 = vsel %vm1458_vm7, %v1072_v22, 0.0  ;;  %v4126_v33 = vpop.f32.mrb[23].mxu1  ;;  %v1081_v48 = vmul.f32 %v4064_v4, %v3980_v50  ;;  %vm1082_vm4 = vcmp.eq.f32.partialorder %v3980_v50, inf }
 0x1aa   : > { %3324 = vrsqrt.f32 %v4115_v12  ;;  %v904_v45 = vmul.f32 %v673_v52, %v673_v52  ;;  %v1118_v25 = vsel %vm1117_vm14, %v4035_v34, %v1116_v21  ;;  %v3315_v61 = vpop.eup %3314  ;;  %vm1084_vm5 = vcmp.eq.f32.partialorder %v3980_v50, 0.0 }
 0x1ab   : > { %v4134_v2 = vadd.f32 1e-06, %v905_v8  ;;  %v1121_v46 = vsel %vm1119_vm15, %v1120_v29, %v1118_v25  ;;  %v4140_v27 = vpop.eup %3316  ;;  %v3116_v40 = vpop.f32.mrb[24].mxu0  ;;  %v1130_v1 = vmul.f32 %v3315_v61, %v4059_v0  ;;  %v1083_v4 = vsel %vm1082_vm4, %v3980_v50, %v1081_v48 }
 0x1ac   : > { %v4142_v39 = vadd.f32 1e-06, %v904_v45  ;;  %v1504_v63 = vsel %vm1458_vm7, %v1121_v46, 0.0  ;;  %v4147_v6 = vpop.f32.mrb[24].mxu1  ;;  %1487 = vadd.xlane.f32.xlu1 %v1486_v24  ;;  %v907_v34 = vmul.f32 %v3116_v40, %v3116_v40  ;;  %v683_v29 = vpop.f32.mrb[25].mxu0  ;;  %v1085_v7 = vand.u32 2147483648, %v3980_v50 }
 0x1ad   : > { %3326 = vrsqrt.f32 %v4134_v2  ;;  %1505 = vadd.xlane.f32.xlu0 %v1504_v63  ;;  %vm1145_vm6 = vcmp.eq.f32.partialorder %v4082_v18, inf  ;;  %v4152_v17 = vpop.f32.mrb[25].mxu1  ;;  %v906_v19 = vmul.f32 %v683_v29, %v683_v29  ;;  %v1132_v21 = vsel %vm1131_vm2, %v4059_v0, %v1130_v1 }
 0x1ae   : > { %3328 = vrsqrt.f32 %v4142_v39  ;;  %vm1147_vm8 = vcmp.eq.f32.partialorder %v4082_v18, 0.0  ;;  %v3319_v22 = vpop.eup %3318  ;;  %v4159_v24 = vadd.f32 1e-06, %v907_v34  ;;  %v1135_v8 = vsel %vm1133_vm3, %v1134_v26, %v1132_v21 }
 0x1af   : > { %v1086_v52 = vsel %vm1084_vm5, %v1085_v7, %v1083_v4  ;;  %v1148_v45 = vand.u32 2147483648, %v4082_v18  ;;  %v4166_v25 = vpop.eup %3320  ;;  %v4168_v48 = vadd.f32 1e-06, %v906_v19  ;;  %v3119_v61 = vpop.f32.mrb[26].mxu0  ;;  %v1510_v46 = vsel %vm1458_vm7, %v1135_v8, 0.0 }
 0x1b0   : > { %v1489_v40 = vsel %vm1458_vm7, %v1086_v52, 0.0  ;;  %v1144_v63 = vmul.f32 %v3319_v22, %v4082_v18  ;;  %v4173_v1 = vpop.f32.mrb[26].mxu1  ;;  %3330 = vrsqrt.f32 %v4159_v24  ;;  %1484 = vadd.xlane.f32.xlu1 %v1483_v55  ;;  %v909_v50 = vmul.f32 %v3119_v61, %v3119_v61  ;;  %v693_v0 = vpop.f32.mrb[27].mxu0 }
 0x1b1   : > { %5087 = vst [vmem:[#allocation5_spill] sm:$0xff] %v4173_v1  ;;  %1511 = vadd.xlane.f32.xlu0 %v1510_v46  ;;  %v1095_v26 = vmul.f32 %v4088_v35, %v4014_v16  ;;  %vm1096_vm9 = vcmp.eq.f32.partialorder %v4014_v16, inf  ;;  %v4179_v4 = vpop.f32.mrb[27].mxu1  ;;  %3332 = vrsqrt.f32 %v4168_v48  ;;  %v908_v34 = vmul.f32 %v693_v0, %v693_v0 }
 0x1b2   : > { %5088 = vst [vmem:[#allocation6_spill] sm:$0xff] %v4179_v4  ;;  %v1146_v29 = vsel %vm1145_vm6, %v4082_v18, %v1144_v63  ;;  %vm1098_vm10 = vcmp.eq.f32.partialorder %v4014_v16, 0.0  ;;  %v3323_v55 = vpop.eup %3322  ;;  %v4186_v7 = vadd.f32 1e-06, %v909_v50  ;;  %v1099_v21 = vand.u32 2147483648, %v4014_v16 }
 0x1b3   : > { %v1149_v19 = vsel %vm1147_vm8, %v1148_v45, %v1146_v29  ;;  %v1097_v35 = vsel %vm1096_vm9, %v4014_v16, %v1095_v26  ;;  %v4194_v8 = vadd.f32 1e-06, %v908_v34  ;;  %v3122_v52 = vpop.f32.mrb[28].mxu0  ;;  %v1158_v46 = vmul.f32 %v3323_v55, %v4107_v47  ;;  %v4199_v63 = vpop.f32.mrb[28].mxu1 }
 0x1b4   : > { %v4192_v22 = vpop.eup %3324  ;;  %v1516_v61 = vsel %vm1458_vm7, %v1149_v19, 0.0  ;;  %vm1159_vm11 = vcmp.eq.f32.partialorder %v4107_v47, inf  ;;  %5089 = vst [vmem:[#allocation7_spill] sm:$0xff] %v4199_v63  ;;  %3334 = vrsqrt.f32 %v4186_v7  ;;  %1490 = vadd.xlane.f32.xlu1 %v1489_v40  ;;  %v911_v18 = vmul.f32 %v3122_v52, %v3122_v52  ;;  %v703_v45 = vpop.f32.mrb[29].mxu0 }
 0x1b5   : > { %1517 = vadd.xlane.f32.xlu0 %v1516_v61  ;;  %v1100_v50 = vsel %vm1098_vm10, %v1099_v21, %v1097_v35  ;;  %vm1161_vm12 = vcmp.eq.f32.partialorder %v4107_v47, 0.0  ;;  %v4205_v0 = vpop.f32.mrb[29].mxu1  ;;  %3336 = vrsqrt.f32 %v4194_v8  ;;  %v910_v26 = vmul.f32 %v703_v45, %v703_v45 }
 0x1b6   : > { %5090 = vst [vmem:[#allocation8_spill] sm:$0xff] %v4205_v0  ;;  %v1495_v34 = vsel %vm1458_vm7, %v1100_v50, 0.0  ;;  %v1160_v29 = vsel %vm1159_vm11, %v4107_v47, %v1158_v46  ;;  %v4210_v19 = vadd.f32 1e-06, %v911_v18  ;;  %v1162_v40 = vand.u32 2147483648, %v4107_v47 }
 0x1b7   : > { %v3327_v55 = vpop.eup %3326  ;;  %v1109_v16 = vmul.f32 %v4113_v11, %v4041_v43  ;;  %vm1110_vm13 = vcmp.eq.f32.partialorder %v4041_v43, inf  ;;  %v4218_v21 = vadd.f32 1e-06, %v910_v26  ;;  %v3125_v52 = vpop.f32.mrb[30].mxu0  ;;  %vm1112_vm14 = vcmp.eq.f32.partialorder %v4041_v43, 0.0 }
 0x1b8   : > { %v4216_v35 = vpop.eup %3328  ;;  %v1113_v61 = vand.u32 2147483648, %v4041_v43  ;;  %v1172_v46 = vmul.f32 %v3327_v55, %v4134_v2  ;;  %v4223_v18 = vpop.f32.mrb[30].mxu1  ;;  %3338 = vrsqrt.f32 %v4210_v19  ;;  %1496 = vadd.xlane.f32.xlu1 %v1495_v34  ;;  %v913_v45 = vmul.f32 %v3125_v52, %v3125_v52 }
 0x1b9   : > { %5091 = vst [vmem:[#allocation9_spill] sm:$0xff] %v4223_v18  ;;  %v713_v11 = vpop.f32.mrb[31].mxu0  ;;  %v1163_v50 = vsel %vm1161_vm12, %v1162_v40, %v1160_v29  ;;  %v1111_v26 = vsel %vm1110_vm13, %v4041_v43, %v1109_v16  ;;  %v4229_v0 = vpop.f32.mrb[31].mxu1  ;;  %3340 = vrsqrt.f32 %v4218_v21  ;;  %vm1173_vm15 = vcmp.eq.f32.partialorder %v4134_v2, inf }
 0x1ba   : > { %v912_v63 = vmul.f32 %v713_v11, %v713_v11  ;;  %v1522_v4 = vsel %vm1458_vm7, %v1163_v50, 0.0  ;;  %v1114_v55 = vsel %vm1112_vm14, %v1113_v61, %v1111_v26  ;;  %v3331_v1 = vpop.eup %3330  ;;  %v4233_v18 = vadd.f32 1e-06, %v913_v45 }
 0x1bb   : > { %1523 = vadd.xlane.f32.xlu0 %v1522_v4  ;;  %v1501_v34 = vsel %vm1458_vm7, %v1114_v55, 0.0  ;;  %vm1175_vm0 = vcmp.eq.f32.partialorder %v4134_v2, 0.0  ;;  %v4238_v47 = vpop.eup %3332  ;;  %v1174_v29 = vsel %vm1173_vm15, %v4134_v2, %v1172_v46  ;;  %v1176_v40 = vand.u32 2147483648, %v4134_v2 }
 0x1bc   : > { %v4240_v43 = vadd.f32 1e-06, %v912_v63  ;;  %v1123_v16 = vmul.f32 %v4140_v27, %v4066_v5  ;;  %3342 = vrsqrt.f32 %v4233_v18  ;;  %1502 = vadd.xlane.f32.xlu1 %v1501_v34  ;;  %vm1124_vm1 = vcmp.eq.f32.partialorder %v4066_v5, inf }
 0x1bd   : > { %vm1126_vm2 = vcmp.eq.f32.partialorder %v4066_v5, 0.0  ;;  %v1127_v4 = vand.u32 2147483648, %v4066_v5  ;;  %v1177_v63 = vsel %vm1175_vm0, %v1176_v40, %v1174_v29  ;;  %v1186_v61 = vmul.f32 %v3331_v1, %v4159_v24 }
 0x1be   : > { %3344 = vrsqrt.f32 %v4240_v43  ;;  %v1125_v52 = vsel %vm1124_vm1, %v4066_v5, %v1123_v16  ;;  %v3335_v2 = vpop.eup %3334  ;;  %v1528_v46 = vsel %vm1458_vm7, %v1177_v63, 0.0  ;;  %vm1187_vm3 = vcmp.eq.f32.partialorder %v4159_v24, inf }
 0x1bf   : > { %v1128_v27 = vsel %vm1126_vm2, %v1127_v4, %v1125_v52  ;;  %vm1189_vm4 = vcmp.eq.f32.partialorder %v4159_v24, 0.0  ;;  %v4256_v45 = vpop.eup %3336  ;;  %1529 = vadd.xlane.f32.xlu0 %v1528_v46  ;;  %v1188_v50 = vsel %vm1187_vm3, %v4159_v24, %v1186_v61  ;;  %v1190_v26 = vand.u32 2147483648, %v4159_v24 }
 0x1c0   : > { %v1507_v11 = vsel %vm1458_vm7, %v1128_v27, 0.0  ;;  %3346 = vrsqrt.f32 %v3946_v23  ;;  %v1137_v5 = vmul.f32 %v4166_v25, %v4090_v38  ;;  %vm1138_vm5 = vcmp.eq.f32.partialorder %v4090_v38, inf }
 0x1c1   : > { %1508 = vadd.xlane.f32.xlu1 %v1507_v11  ;;  %vm1140_vm6 = vcmp.eq.f32.partialorder %v4090_v38, 0.0  ;;  %v1141_v1 = vand.u32 2147483648, %v4090_v38  ;;  %v1191_v55 = vsel %vm1189_vm4, %v1190_v26, %v1188_v50  ;;  %v4268_v34 = vadd.f32 1e-06, %v3921_v9 }
 0x1c2   : > { %v1200_v29 = vmul.f32 %v3335_v2, %v4186_v7  ;;  %vm1201_vm8 = vcmp.eq.f32.partialorder %v4186_v7, inf  ;;  %v3339_v24 = vpop.eup %3338  ;;  %v1534_v40 = vsel %vm1458_vm7, %v1191_v55, 0.0  ;;  %v1139_v16 = vsel %vm1138_vm5, %v4090_v38, %v1137_v5 }
 0x1c3   : > { %vm1203_vm9 = vcmp.eq.f32.partialorder %v4186_v7, 0.0  ;;  %v1204_v25 = vand.u32 2147483648, %v4186_v7  ;;  %v4276_v4 = vpop.eup %3340  ;;  %1535 = vadd.xlane.f32.xlu0 %v1534_v40  ;;  %v1142_v63 = vsel %vm1140_vm6, %v1141_v1, %v1139_v16  ;;  %3348 = vrsqrt.f32 %v4268_v34 }
 0x1c4   : > { %v1202_v9 = vsel %vm1201_vm8, %v4186_v7, %v1200_v29  ;;  %v921_v52 = vmul.f32 %v3901_v58, %v3901_v58  ;;  %v1513_v61 = vsel %vm1458_vm7, %v1142_v63, 0.0  ;;  %v1151_v38 = vmul.f32 %v4192_v22, %v4115_v12 }
 0x1c5   : > { %v1205_v2 = vsel %vm1203_vm9, %v1204_v25, %v1202_v9  ;;  %vm1152_vm10 = vcmp.eq.f32.partialorder %v4115_v12, inf  ;;  %1514 = vadd.xlane.f32.xlu1 %v1513_v61  ;;  %vm1154_vm11 = vcmp.eq.f32.partialorder %v4115_v12, 0.0  ;;  %v1155_v7 = vand.u32 2147483648, %v4115_v12 }
 0x1c6   : > { %v1540_v46 = vsel %vm1458_vm7, %v1205_v2, 0.0  ;;  %v4287_v27 = vadd.f32 1e-06, %v921_v52  ;;  %v3343_v11 = vpop.eup %3342  ;;  %v1153_v58 = vsel %vm1152_vm10, %v4115_v12, %v1151_v38  ;;  %v920_v50 = vmul.f32 %v3906_v62, %v3906_v62 }
 0x1c7   : > { %v1214_v26 = vmul.f32 %v3339_v24, %v4210_v19  ;;  %vm1215_vm12 = vcmp.eq.f32.partialorder %v4210_v19, inf  ;;  %1541 = vadd.xlane.f32.xlu0 %v1540_v46  ;;  %v1156_v5 = vsel %vm1154_vm11, %v1155_v7, %v1153_v58  ;;  %vm1217_vm13 = vcmp.eq.f32.partialorder %v4210_v19, 0.0 }
 0x1c8   : > { %v4296_v22 = vpop.eup %3344  ;;  %3350 = vrsqrt.f32 %v4287_v27  ;;  %v1218_v1 = vand.u32 2147483648, %v4210_v19  ;;  %v1519_v55 = vsel %vm1458_vm7, %v1156_v5, 0.0  ;;  %v4302_v12 = vadd.f32 1e-06, %v920_v50 }
 0x1c9   : > { %v1216_v62 = vsel %vm1215_vm12, %v4210_v19, %v1214_v26  ;;  %v923_v29 = vmul.f32 %v3923_v10, %v3923_v10  ;;  %1520 = vadd.xlane.f32.xlu1 %v1519_v55  ;;  %v1165_v16 = vmul.f32 %v4216_v35, %v4142_v39  ;;  %vm1166_vm14 = vcmp.eq.f32.partialorder %v4142_v39, inf }
 0x1ca   : > { %v4307_v24 = vpop.eup %3346  ;;  %v1219_v40 = vsel %vm1217_vm13, %v1218_v1, %v1216_v62  ;;  %vm1168_vm15 = vcmp.eq.f32.partialorder %v4142_v39, 0.0  ;;  %3352 = vrsqrt.f32 %v4302_v12  ;;  %v1169_v19 = vand.u32 2147483648, %v4142_v39 }
 0x1cb   : > { %v1546_v25 = vsel %vm1458_vm7, %v1219_v40, 0.0  ;;  %v4315_v63 = vadd.f32 1e-06, %v923_v29  ;;  %v1167_v10 = vsel %vm1166_vm14, %v4142_v39, %v1165_v16  ;;  %v922_v9 = vmul.f32 %v3929_v15, %v3929_v15 }
 0x1cc   : > { %1547 = vadd.xlane.f32.xlu0 %v1546_v25  ;;  %v1228_v35 = vmul.f32 %v3343_v11, %v4233_v18  ;;  %vm1229_vm0 = vcmp.eq.f32.partialorder %v4233_v18, inf  ;;  %v1170_v52 = vsel %vm1168_vm15, %v1169_v19, %v1167_v10  ;;  %vm1231_vm1 = vcmp.eq.f32.partialorder %v4233_v18, 0.0 }
 0x1cd   : > { %3354 = vrsqrt.f32 %v4315_v63  ;;  %v1232_v61 = vand.u32 2147483648, %v4233_v18  ;;  %v4326_v2 = vpop.eup %3348  ;;  %v1525_v38 = vsel %vm1458_vm7, %v1170_v52, 0.0  ;;  %v4329_v46 = vadd.f32 1e-06, %v922_v9 }
 0x1ce   : > { %v1230_v39 = vsel %vm1229_vm0, %v4233_v18, %v1228_v35  ;;  %v925_v15 = vmul.f32 %v3954_v30, %v3954_v30  ;;  %1526 = vadd.xlane.f32.xlu1 %v1525_v38  ;;  %v1179_v11 = vmul.f32 %v4238_v47, %v4168_v48  ;;  %vm1180_vm2 = vcmp.eq.f32.partialorder %v4168_v48, inf }
 0x1cf   : > { %v1233_v7 = vsel %vm1231_vm1, %v1232_v61, %v1230_v39  ;;  %vm1182_vm3 = vcmp.eq.f32.partialorder %v4168_v48, 0.0  ;;  %3356 = vrsqrt.f32 %v4329_v46  ;;  %v1183_v18 = vand.u32 2147483648, %v4168_v48 }
 0x1d0   : > { %v1552_v58 = vsel %vm1458_vm7, %v1233_v7, 0.0  ;;  %v4340_v50 = vadd.f32 1e-06, %v925_v15  ;;  %v1181_v30 = vsel %vm1180_vm2, %v4168_v48, %v1179_v11  ;;  %v924_v26 = vmul.f32 %v3962_v37, %v3962_v37 }
 0x1d1   : > { %1553 = vadd.xlane.f32.xlu0 %v1552_v58  ;;  %v1242_v47 = vmul.f32 %v3956_v31, %v3878_v41  ;;  %vm1243_vm4 = vcmp.eq.f32.partialorder %v3878_v41, inf  ;;  %v1184_v1 = vsel %vm1182_vm3, %v1183_v18, %v1181_v30  ;;  %vm1245_vm5 = vcmp.eq.f32.partialorder %v3878_v41, 0.0 }
 0x1d2   : > { %v4349_v5 = vpop.eup %3350  ;;  %3358 = vrsqrt.f32 %v4340_v50  ;;  %v1246_v55 = vand.u32 2147483648, %v3878_v41  ;;  %v1531_v62 = vsel %vm1458_vm7, %v1184_v1, 0.0  ;;  %v4355_v48 = vadd.f32 1e-06, %v924_v26 }
 0x1d3   : > { %v1244_v37 = vsel %vm1243_vm4, %v3878_v41, %v1242_v47  ;;  %v927_v31 = vmul.f32 %v3988_v59, %v3988_v59  ;;  %1532 = vadd.xlane.f32.xlu1 %v1531_v62  ;;  %v1193_v40 = vmul.f32 %v4256_v45, %v4194_v8  ;;  %vm1194_vm6 = vcmp.eq.f32.partialorder %v4194_v8, inf }
 0x1d4   : > { %v1247_v29 = vsel %vm1245_vm5, %v1246_v55, %v1244_v37  ;;  %vm1196_vm8 = vcmp.eq.f32.partialorder %v4194_v8, 0.0  ;;  %v4364_v16 = vpop.eup %3352  ;;  %3360 = vrsqrt.f32 %v4355_v48  ;;  %v1197_v41 = vand.u32 2147483648, %v4194_v8 }
 0x1d5   : > { %v1558_v25 = vsel %vm1458_vm7, %v1247_v29, 0.0  ;;  %v4368_v19 = vadd.f32 1e-06, %v927_v31  ;;  %v1195_v59 = vsel %vm1194_vm6, %v4194_v8, %v1193_v40  ;;  %v926_v45 = vmul.f32 %v3995_v3, %v3995_v3 }
 0x1d6   : > { %1559 = vadd.xlane.f32.xlu0 %v1558_v25  ;;  %v1256_v10 = vmul.f32 %v3990_v60, %v3894_v54  ;;  %vm1257_vm9 = vcmp.eq.f32.partialorder %v3894_v54, inf  ;;  %v1198_v35 = vsel %vm1196_vm8, %v1197_v41, %v1195_v59  ;;  %vm1259_vm10 = vcmp.eq.f32.partialorder %v3894_v54, 0.0 }
 0x1d7   : > { %v4377_v9 = vpop.eup %3354  ;;  %3362 = vrsqrt.f32 %v4368_v19  ;;  %v1260_v52 = vand.u32 2147483648, %v3894_v54  ;;  %v1537_v61 = vsel %vm1458_vm7, %v1198_v35, 0.0  ;;  %v4383_v8 = vadd.f32 1e-06, %v926_v45 }
 0x1d8   : > { %v1258_v3 = vsel %vm1257_vm9, %v3894_v54, %v1256_v10  ;;  %v929_v60 = vmul.f32 %v4023_v14, %v4023_v14  ;;  %1538 = vadd.xlane.f32.xlu1 %v1537_v61  ;;  %v1207_v39 = vmul.f32 %v4276_v4, %v4218_v21  ;;  %vm1208_vm11 = vcmp.eq.f32.partialorder %v4218_v21, inf }
 0x1d9   : > { %v1261_v38 = vsel %vm1259_vm10, %v1260_v52, %v1258_v3  ;;  %vm1210_vm12 = vcmp.eq.f32.partialorder %v4218_v21, 0.0  ;;  %v4392_v15 = vpop.eup %3356  ;;  %3364 = vrsqrt.f32 %v4383_v8  ;;  %v1211_v54 = vand.u32 2147483648, %v4218_v21 }
 0x1da   : > { %v1564_v7 = vsel %vm1458_vm7, %v1261_v38, 0.0  ;;  %v4396_v11 = vadd.f32 1e-06, %v929_v60  ;;  %v1209_v14 = vsel %vm1208_vm11, %v4218_v21, %v1207_v39  ;;  %v928_v4 = vmul.f32 %v4028_v28, %v4028_v28 }
 0x1db   : > { %1565 = vadd.xlane.f32.xlu0 %v1564_v7  ;;  %v1270_v58 = vmul.f32 %v4307_v24, %v3946_v23  ;;  %vm1271_vm13 = vcmp.eq.f32.partialorder %v3946_v23, inf  ;;  %v1212_v30 = vsel %vm1210_vm12, %v1211_v54, %v1209_v14  ;;  %vm1273_vm14 = vcmp.eq.f32.partialorder %v3946_v23, 0.0 }
 0x1dc   : > { %v4405_v18 = vpop.eup %3358  ;;  %3366 = vrsqrt.f32 %v4396_v11  ;;  %v1274_v26 = vand.u32 2147483648, %v3946_v23  ;;  %v1543_v47 = vsel %vm1458_vm7, %v1212_v30, 0.0  ;;  %v4411_v21 = vadd.f32 1e-06, %v928_v4 }
 0x1dd   : > { %v1272_v28 = vsel %vm1271_vm13, %v3946_v23, %v1270_v58  ;;  %v931_v24 = vmul.f32 %v4048_v49, %v4048_v49  ;;  %1544 = vadd.xlane.f32.xlu1 %v1543_v47  ;;  %v1221_v55 = vmul.f32 %v4296_v22, %v4240_v43  ;;  %vm1222_vm15 = vcmp.eq.f32.partialorder %v4240_v43, inf }
 0x1de   : > { %v1275_v1 = vsel %vm1273_vm14, %v1274_v26, %v1272_v28  ;;  %vm1224_vm0 = vcmp.eq.f32.partialorder %v4240_v43, 0.0  ;;  %v4420_v62 = vpop.eup %3360  ;;  %3368 = vrsqrt.f32 %v4411_v21  ;;  %v1225_v23 = vand.u32 2147483648, %v4240_v43 }
 0x1df   : > { %v1570_v37 = vsel %vm1458_vm7, %v1275_v1, 0.0  ;;  %v4424_v31 = vadd.f32 1e-06, %v931_v24  ;;  %v1223_v49 = vsel %vm1222_vm15, %v4240_v43, %v1221_v55  ;;  %v930_v22 = vmul.f32 %v4054_v56, %v4054_v56 }
 0x1e0   : > { %1571 = vadd.xlane.f32.xlu0 %v1570_v37  ;;  %v1284_v29 = vmul.f32 %v4349_v5, %v4287_v27  ;;  %vm1285_vm1 = vcmp.eq.f32.partialorder %v4287_v27, inf  ;;  %v1226_v25 = vsel %vm1224_vm0, %v1225_v23, %v1223_v49  ;;  %vm1287_vm2 = vcmp.eq.f32.partialorder %v4287_v27, 0.0 }
 0x1e1   : > { %v4433_v40 = vpop.eup %3362  ;;  %3370 = vrsqrt.f32 %v4424_v31  ;;  %v1288_v41 = vand.u32 2147483648, %v4287_v27  ;;  %v1549_v59 = vsel %vm1458_vm7, %v1226_v25, 0.0  ;;  %v4439_v43 = vadd.f32 1e-06, %v930_v22 }
 0x1e2   : > { %v1286_v56 = vsel %vm1285_vm1, %v4287_v27, %v1284_v29  ;;  %v933_v5 = vmul.f32 %v4071_v13, %v4071_v13  ;;  %1550 = vadd.xlane.f32.xlu1 %v1549_v59  ;;  %v1235_v10 = vmul.f32 %v3964_v32, %v3882_v44  ;;  %vm1236_vm3 = vcmp.eq.f32.partialorder %v3882_v44, inf }
 0x1e3   : > { %v1289_v45 = vsel %vm1287_vm2, %v1288_v41, %v1286_v56  ;;  %vm1238_vm4 = vcmp.eq.f32.partialorder %v3882_v44, 0.0  ;;  %v4448_v35 = vpop.eup %3364  ;;  %3372 = vrsqrt.f32 %v4439_v43  ;;  %v1239_v27 = vand.u32 2147483648, %v3882_v44 }
 0x1e4   : > { %v1576_v52 = vsel %vm1458_vm7, %v1289_v45, 0.0  ;;  %v4452_v61 = vadd.f32 1e-06, %v933_v5  ;;  %v1237_v13 = vsel %vm1236_vm3, %v3882_v44, %v1235_v10  ;;  %v932_v32 = vmul.f32 %v4075_v53, %v4075_v53 }
 0x1e5   : > { %1577 = vadd.xlane.f32.xlu0 %v1576_v52  ;;  %v1298_v3 = vmul.f32 %v4377_v9, %v4315_v63  ;;  %vm1299_vm5 = vcmp.eq.f32.partialorder %v4315_v63, inf  ;;  %v1240_v38 = vsel %vm1238_vm4, %v1239_v27, %v1237_v13  ;;  %vm1301_vm6 = vcmp.eq.f32.partialorder %v4315_v63, 0.0 }
 0x1e6   : > { %v4461_v60 = vpop.eup %3366  ;;  %3374 = vrsqrt.f32 %v4452_v61  ;;  %v1302_v39 = vand.u32 2147483648, %v4315_v63  ;;  %v1555_v7 = vsel %vm1458_vm7, %v1240_v38, 0.0  ;;  %v4467_v44 = vadd.f32 1e-06, %v932_v32 }
 0x1e7   : > { %v1300_v53 = vsel %vm1299_vm5, %v4315_v63, %v1298_v3  ;;  %v935_v9 = vmul.f32 %v4095_v36, %v4095_v36  ;;  %1556 = vadd.xlane.f32.xlu1 %v1555_v7  ;;  %v1249_v14 = vmul.f32 %v3997_v42, %v3899_v57  ;;  %vm1250_vm8 = vcmp.eq.f32.partialorder %v3899_v57, inf  ;;  %v5092_v7 = vld [vmem:[#allocation5_spill] sm:$0xff] }
 0x1e8   : > { %v1303_v54 = vsel %vm1301_vm6, %v1302_v39, %v1300_v53  ;;  %vm1252_vm9 = vcmp.eq.f32.partialorder %v3899_v57, 0.0  ;;  %v4476_v4 = vpop.eup %3368  ;;  %3376 = vrsqrt.f32 %v4467_v44  ;;  %v1253_v63 = vand.u32 2147483648, %v3899_v57 }
 0x1e9   : > { %v1582_v58 = vsel %vm1458_vm7, %v1303_v54, 0.0  ;;  %v4480_v30 = vadd.f32 1e-06, %v935_v9  ;;  %v1251_v36 = vsel %vm1250_vm8, %v3899_v57, %v1249_v14  ;;  %v934_v42 = vmul.f32 %v4100_v51, %v4100_v51 }
 0x1ea   : > { %1583 = vadd.xlane.f32.xlu0 %v1582_v58  ;;  %v1312_v26 = vmul.f32 %v4405_v18, %v4340_v50  ;;  %vm1313_vm10 = vcmp.eq.f32.partialorder %v4340_v50, inf  ;;  %v1254_v28 = vsel %vm1252_vm9, %v1253_v63, %v1251_v36  ;;  %vm1315_vm11 = vcmp.eq.f32.partialorder %v4340_v50, 0.0  ;;  %v5093_v36 = vld [vmem:[#allocation6_spill] sm:$0xff] }
 0x1eb   : > { %v4489_v47 = vpop.eup %3370  ;;  %3378 = vrsqrt.f32 %v4480_v30  ;;  %v1316_v24 = vand.u32 2147483648, %v4340_v50  ;;  %v1561_v1 = vsel %vm1458_vm7, %v1254_v28, 0.0  ;;  %v4495_v57 = vadd.f32 1e-06, %v934_v42 }
 0x1ec   : > { %v1314_v51 = vsel %vm1313_vm10, %v4340_v50, %v1312_v26  ;;  %v937_v18 = vmul.f32 %v4121_v20, %v4121_v20  ;;  %1562 = vadd.xlane.f32.xlu1 %v1561_v1  ;;  %v1263_v37 = vmul.f32 %v4326_v2, %v4268_v34  ;;  %vm1264_vm12 = vcmp.eq.f32.partialorder %v4268_v34, inf }
 0x1ed   : > { %v1317_v55 = vsel %vm1315_vm11, %v1316_v24, %v1314_v51  ;;  %vm1266_vm13 = vcmp.eq.f32.partialorder %v4268_v34, 0.0  ;;  %v4504_v23 = vpop.eup %3372  ;;  %3380 = vrsqrt.f32 %v4495_v57  ;;  %v1267_v50 = vand.u32 2147483648, %v4268_v34 }
 0x1ee   : > { %v1588_v49 = vsel %vm1458_vm7, %v1317_v55, 0.0  ;;  %v4508_v22 = vadd.f32 1e-06, %v937_v18  ;;  %v1265_v20 = vsel %vm1264_vm12, %v4268_v34, %v1263_v37  ;;  %v936_v2 = vmul.f32 %v4126_v33, %v4126_v33  ;;  %v5094_v18 = vld [vmem:[#allocation7_spill] sm:$0xff] }
 0x1ef   : > { %1589 = vadd.xlane.f32.xlu0 %v1588_v49  ;;  %v1326_v29 = vmul.f32 %v4433_v40, %v4368_v19  ;;  %vm1327_vm14 = vcmp.eq.f32.partialorder %v4368_v19, inf  ;;  %v1268_v41 = vsel %vm1266_vm13, %v1267_v50, %v1265_v20  ;;  %vm1329_vm15 = vcmp.eq.f32.partialorder %v4368_v19, 0.0 }
 0x1f0   : > { %v4517_v25 = vpop.eup %3374  ;;  %3382 = vrsqrt.f32 %v4508_v22  ;;  %v1330_v59 = vand.u32 2147483648, %v4368_v19  ;;  %v1567_v56 = vsel %vm1458_vm7, %v1268_v41, 0.0  ;;  %v4523_v34 = vadd.f32 1e-06, %v936_v2 }
 0x1f1   : > { %v1328_v33 = vsel %vm1327_vm14, %v4368_v19, %v1326_v29  ;;  %v939_v40 = vmul.f32 %v4147_v6, %v4147_v6  ;;  %1568 = vadd.xlane.f32.xlu1 %v1567_v56  ;;  %v1277_v45 = vmul.f32 %v4364_v16, %v4302_v12  ;;  %vm1278_vm0 = vcmp.eq.f32.partialorder %v4302_v12, inf  ;;  %v5095_v29 = vld [vmem:[#allocation8_spill] sm:$0xff] }
 0x1f2   : > { %v1331_v5 = vsel %vm1329_vm15, %v1330_v59, %v1328_v33  ;;  %vm1280_vm1 = vcmp.eq.f32.partialorder %v4302_v12, 0.0  ;;  %v4532_v10 = vpop.eup %3376  ;;  %3384 = vrsqrt.f32 %v4523_v34  ;;  %v1281_v19 = vand.u32 2147483648, %v4302_v12 }
 0x1f3   : > { %v1594_v52 = vsel %vm1458_vm7, %v1331_v5, 0.0  ;;  %v4536_v27 = vadd.f32 1e-06, %v939_v40  ;;  %v1279_v6 = vsel %vm1278_vm0, %v4302_v12, %v1277_v45  ;;  %v938_v16 = vmul.f32 %v4152_v17, %v4152_v17  ;;  %v5096_v45 = vld [vmem:[#allocation9_spill] sm:$0xff] }
 0x1f4   : > { %1595 = vadd.xlane.f32.xlu0 %v1594_v52  ;;  %v1340_v13 = vmul.f32 %v4461_v60, %v4396_v11  ;;  %vm1341_vm2 = vcmp.eq.f32.partialorder %v4396_v11, inf  ;;  %v1282_v3 = vsel %vm1280_vm1, %v1281_v19, %v1279_v6  ;;  %vm1343_vm3 = vcmp.eq.f32.partialorder %v4396_v11, 0.0 }
 0x1f5   : > { %v4545_v32 = vpop.eup %3378  ;;  %3386 = vrsqrt.f32 %v4536_v27  ;;  %v1344_v38 = vand.u32 2147483648, %v4396_v11  ;;  %v1573_v39 = vsel %vm1458_vm7, %v1282_v3, 0.0  ;;  %v4551_v12 = vadd.f32 1e-06, %v938_v16 }
 0x1f6   : > { %v1342_v17 = vsel %vm1341_vm2, %v4396_v11, %v1340_v13  ;;  %v941_v60 = vmul.f32 %v5092_v7, %v5092_v7  ;;  %1574 = vadd.xlane.f32.xlu1 %v1573_v39  ;;  %v1291_v9 = vmul.f32 %v4392_v15, %v4329_v46  ;;  %vm1292_vm4 = vcmp.eq.f32.partialorder %v4329_v46, inf }
 0x1f7   : > { %v1345_v53 = vsel %vm1343_vm3, %v1344_v38, %v1342_v17  ;;  %vm1294_vm5 = vcmp.eq.f32.partialorder %v4329_v46, 0.0  ;;  %v4560_v54 = vpop.eup %3380  ;;  %3388 = vrsqrt.f32 %v4551_v12  ;;  %v1295_v11 = vand.u32 2147483648, %v4329_v46 }
 0x1f8   : > { %v1600_v14 = vsel %vm1458_vm7, %v1345_v53, 0.0  ;;  %v4564_v58 = vadd.f32 1e-06, %v941_v60  ;;  %v1293_v63 = vsel %vm1292_vm4, %v4329_v46, %v1291_v9  ;;  %v940_v15 = vmul.f32 %v5093_v36, %v5093_v36 }
 0x1f9   : > { %1601 = vadd.xlane.f32.xlu0 %v1600_v14  ;;  %v1354_v42 = vmul.f32 %v4489_v47, %v4424_v31  ;;  %vm1355_vm6 = vcmp.eq.f32.partialorder %v4424_v31, inf  ;;  %v1296_v28 = vsel %vm1294_vm5, %v1295_v11, %v1293_v63  ;;  %vm1357_vm8 = vcmp.eq.f32.partialorder %v4424_v31, 0.0 }
 0x1fa   : > { %v4573_v26 = vpop.eup %3382  ;;  %3390 = vrsqrt.f32 %v4564_v58  ;;  %v1358_v24 = vand.u32 2147483648, %v4424_v31  ;;  %v1579_v1 = vsel %vm1458_vm7, %v1296_v28, 0.0  ;;  %v4579_v46 = vadd.f32 1e-06, %v940_v15 }
 0x1fb   : > { %v1356_v51 = vsel %vm1355_vm6, %v4424_v31, %v1354_v42  ;;  %v943_v47 = vmul.f32 %v5094_v18, %v5094_v18  ;;  %1580 = vadd.xlane.f32.xlu1 %v1579_v1  ;;  %v1305_v37 = vmul.f32 %v4420_v62, %v4355_v48  ;;  %vm1306_vm9 = vcmp.eq.f32.partialorder %v4355_v48, inf }
 0x1fc   : > { %v1359_v55 = vsel %vm1357_vm8, %v1358_v24, %v1356_v51  ;;  %vm1308_vm10 = vcmp.eq.f32.partialorder %v4355_v48, 0.0  ;;  %v4588_v49 = vpop.eup %3384  ;;  %3392 = vrsqrt.f32 %v4579_v46  ;;  %v1309_v31 = vand.u32 2147483648, %v4355_v48 }
 0x1fd   : > { %v1606_v50 = vsel %vm1458_vm7, %v1359_v55, 0.0  ;;  %v4592_v20 = vadd.f32 1e-06, %v943_v47  ;;  %v1307_v2 = vsel %vm1306_vm9, %v4355_v48, %v1305_v37  ;;  %v942_v62 = vmul.f32 %v5095_v29, %v5095_v29 }
 0x1fe   : > { %1607 = vadd.xlane.f32.xlu0 %v1606_v50  ;;  %v1368_v41 = vmul.f32 %v4517_v25, %v4452_v61  ;;  %vm1369_vm11 = vcmp.eq.f32.partialorder %v4452_v61, inf  ;;  %v1310_v56 = vsel %vm1308_vm10, %v1309_v31, %v1307_v2  ;;  %vm1371_vm12 = vcmp.eq.f32.partialorder %v4452_v61, 0.0 }
 0x1ff   : > { %v3387_v59 = vpop.eup %3386  ;;  %3394 = vrsqrt.f32 %v4592_v20  ;;  %v1372_v33 = vand.u32 2147483648, %v4452_v61  ;;  %v1585_v40 = vsel %vm1458_vm7, %v1310_v56, 0.0  ;;  %v4605_v5 = vadd.f32 1e-06, %v942_v62 }
 0x200   : > { %v1370_v48 = vsel %vm1369_vm11, %v4452_v61, %v1368_v41  ;;  %v945_v52 = vmul.f32 %v5096_v45, %v5096_v45  ;;  %1586 = vadd.xlane.f32.xlu1 %v1585_v40  ;;  %v1319_v19 = vmul.f32 %v4448_v35, %v4383_v8  ;;  %vm1320_vm13 = vcmp.eq.f32.partialorder %v4383_v8, inf }
 0x201   : > { %v1373_v25 = vsel %vm1371_vm12, %v1372_v33, %v1370_v48  ;;  %vm1322_vm14 = vcmp.eq.f32.partialorder %v4383_v8, 0.0  ;;  %v4614_v6 = vpop.eup %3388  ;;  %3396 = vrsqrt.f32 %v4605_v5  ;;  %v1323_v61 = vand.u32 2147483648, %v4383_v8 }
 0x202   : > { %v1612_v16 = vsel %vm1458_vm7, %v1373_v25, 0.0  ;;  %v4618_v13 = vadd.f32 1e-06, %v945_v52  ;;  %v1321_v3 = vsel %vm1320_vm13, %v4383_v8, %v1319_v19  ;;  %v944_v35 = vmul.f32 %v4229_v0, %v4229_v0 }
 0x203   : > { %1613 = vadd.xlane.f32.xlu0 %v1612_v16  ;;  %v1382_v38 = vmul.f32 %v4545_v32, %v4480_v30  ;;  %vm1383_vm15 = vcmp.eq.f32.partialorder %v4480_v30, inf  ;;  %v1324_v17 = vsel %vm1322_vm14, %v1323_v61, %v1321_v3  ;;  %vm1385_vm0 = vcmp.eq.f32.partialorder %v4480_v30, 0.0 }
 0x204   : > { %v3391_v39 = vpop.eup %3390  ;;  %3398 = vrsqrt.f32 %v4618_v13  ;;  %v1386_v7 = vand.u32 2147483648, %v4480_v30  ;;  %v1591_v60 = vsel %vm1458_vm7, %v1324_v17, 0.0  ;;  %v4631_v53 = vadd.f32 1e-06, %v944_v35 }
 0x205   : > { %v1384_v8 = vsel %vm1383_vm15, %v4480_v30, %v1382_v38  ;;  %v1333_v0 = vmul.f32 %v4476_v4, %v4411_v21  ;;  %1592 = vadd.xlane.f32.xlu1 %v1591_v60  ;;  %vm1334_vm1 = vcmp.eq.f32.partialorder %v4411_v21, inf  ;;  %vm1336_vm2 = vcmp.eq.f32.partialorder %v4411_v21, 0.0 }
 0x206   : > { %v1387_v32 = vsel %vm1385_vm0, %v1386_v7, %v1384_v8  ;;  %v1337_v9 = vand.u32 2147483648, %v4411_v21  ;;  %v4639_v14 = vpop.eup %3392  ;;  %3400 = vrsqrt.f32 %v4631_v53  ;;  %v1396_v30 = vmul.f32 %v4573_v26, %v4508_v22 }
 0x207   : > { %v1618_v11 = vsel %vm1458_vm7, %v1387_v32, 0.0  ;;  %v1335_v63 = vsel %vm1334_vm1, %v4411_v21, %v1333_v0  ;;  %vm1397_vm3 = vcmp.eq.f32.partialorder %v4508_v22, inf  ;;  %vm1399_vm4 = vcmp.eq.f32.partialorder %v4508_v22, 0.0 }
 0x208   : > { %1619 = vadd.xlane.f32.xlu0 %v1618_v11  ;;  %v1338_v4 = vsel %vm1336_vm2, %v1337_v9, %v1335_v63  ;;  %v1400_v36 = vand.u32 2147483648, %v4508_v22  ;;  %v1398_v28 = vsel %vm1397_vm3, %v4508_v22, %v1396_v30  ;;  %v1347_v24 = vmul.f32 %v4504_v23, %v4439_v43 }
 0x209   : > { %v3395_v15 = vpop.eup %3394  ;;  %v1597_v42 = vsel %vm1458_vm7, %v1338_v4, 0.0  ;;  %vm1348_vm5 = vcmp.eq.f32.partialorder %v4439_v43, inf  ;;  %vm1350_vm6 = vcmp.eq.f32.partialorder %v4439_v43, 0.0  ;;  %v1351_v26 = vand.u32 2147483648, %v4439_v43 }
 0x20a   : > { %1598 = vadd.xlane.f32.xlu1 %v1597_v42  ;;  %v1401_v21 = vsel %vm1399_vm4, %v1400_v36, %v1398_v28  ;;  %v1410_v1 = vmul.f32 %v3387_v59, %v4536_v27  ;;  %v1349_v18 = vsel %vm1348_vm5, %v4439_v43, %v1347_v24  ;;  %vm1411_vm8 = vcmp.eq.f32.partialorder %v4536_v27, inf }
 0x20b   : > { %v1624_v51 = vsel %vm1458_vm7, %v1401_v21, 0.0  ;;  %vm1413_vm9 = vcmp.eq.f32.partialorder %v4536_v27, 0.0  ;;  %v4661_v22 = vpop.eup %3396  ;;  %v1352_v23 = vsel %vm1350_vm6, %v1351_v26, %v1349_v18  ;;  %v1414_v55 = vand.u32 2147483648, %v4536_v27 }
 0x20c   : > { %1625 = vadd.xlane.f32.xlu0 %v1624_v51  ;;  %v1412_v47 = vsel %vm1411_vm8, %v4536_v27, %v1410_v1  ;;  %v1361_v37 = vmul.f32 %v4532_v10, %v4467_v44  ;;  %v1603_v50 = vsel %vm1458_vm7, %v1352_v23, 0.0  ;;  %vm1362_vm10 = vcmp.eq.f32.partialorder %v4467_v44, inf }
 0x20d   : > { %vm1364_vm11 = vcmp.eq.f32.partialorder %v4467_v44, 0.0  ;;  %v1365_v43 = vand.u32 2147483648, %v4467_v44  ;;  %v1415_v2 = vsel %vm1413_vm9, %v1414_v55, %v1412_v47  ;;  %v1424_v62 = vmul.f32 %v3391_v39, %v4564_v58 }
 0x20e   : > { %v3399_v31 = vpop.eup %3398  ;;  %1604 = vadd.xlane.f32.xlu1 %v1603_v50  ;;  %v1363_v29 = vsel %vm1362_vm10, %v4467_v44, %v1361_v37  ;;  %vm1425_vm12 = vcmp.eq.f32.partialorder %v4564_v58, inf  ;;  %v1630_v27 = vsel %vm1458_vm7, %v1415_v2, 0.0  ;;  %vm1427_vm13 = vcmp.eq.f32.partialorder %v4564_v58, 0.0 }
 0x20f   : > { %v1366_v10 = vsel %vm1364_vm11, %v1365_v43, %v1363_v29  ;;  %v1428_v41 = vand.u32 2147483648, %v4564_v58  ;;  %v1426_v56 = vsel %vm1425_vm12, %v4564_v58, %v1424_v62  ;;  %v1375_v33 = vmul.f32 %v4560_v54, %v4495_v57 }
 0x210   : > { %1631 = vadd.xlane.f32.xlu0 %v1630_v27  ;;  %v1609_v59 = vsel %vm1458_vm7, %v1366_v10, 0.0  ;;  %vm1376_vm14 = vcmp.eq.f32.partialorder %v4495_v57, inf  ;;  %v3401_v44 = vpop.eup %3400  ;;  %vm1378_vm15 = vcmp.eq.f32.partialorder %v4495_v57, 0.0  ;;  %v1379_v48 = vand.u32 2147483648, %v4495_v57 }
 0x211   : > { %v1429_v40 = vsel %vm1427_vm13, %v1428_v41, %v1426_v56  ;;  %v1438_v45 = vmul.f32 %v3395_v15, %v4592_v20  ;;  %v1377_v25 = vsel %vm1376_vm14, %v4495_v57, %v1375_v33  ;;  %vm1439_vm0 = vcmp.eq.f32.partialorder %v4592_v20, inf }
 0x212   : > { %1610 = vadd.xlane.f32.xlu1 %v1609_v59  ;;  %v1636_v52 = vsel %vm1458_vm7, %v1429_v40, 0.0  ;;  %vm1441_vm1 = vcmp.eq.f32.partialorder %v4592_v20, 0.0  ;;  %v1380_v54 = vsel %vm1378_vm15, %v1379_v48, %v1377_v25  ;;  %v1442_v19 = vand.u32 2147483648, %v4592_v20 }
 0x213   : > { %v1440_v58 = vsel %vm1439_vm0, %v4592_v20, %v1438_v45  ;;  %v1389_v16 = vmul.f32 %v4588_v49, %v4523_v34  ;;  %v1615_v61 = vsel %vm1458_vm7, %v1380_v54, 0.0  ;;  %vm1390_vm2 = vcmp.eq.f32.partialorder %v4523_v34, inf }
 0x214   : > { %1637 = vadd.xlane.f32.xlu0 %v1636_v52  ;;  %vm1392_vm3 = vcmp.eq.f32.partialorder %v4523_v34, 0.0  ;;  %v1393_v57 = vand.u32 2147483648, %v4523_v34  ;;  %v1443_v3 = vsel %vm1441_vm1, %v1442_v19, %v1440_v58  ;;  %v1452_v38 = vmul.f32 %v3399_v31, %v4618_v13 }
 0x215   : > { %v1391_v35 = vsel %vm1390_vm2, %v4523_v34, %v1389_v16  ;;  %vm1453_vm4 = vcmp.eq.f32.partialorder %v4618_v13, inf  ;;  %v1642_v20 = vsel %vm1458_vm7, %v1443_v3, 0.0  ;;  %vm1455_vm5 = vcmp.eq.f32.partialorder %v4618_v13, 0.0 }
 0x216   : > { %1616 = vadd.xlane.f32.xlu1 %v1615_v61  ;;  %v1394_v49 = vsel %vm1392_vm3, %v1393_v57, %v1391_v35  ;;  %v1456_v39 = vand.u32 2147483648, %v4618_v13  ;;  %v1454_v7 = vsel %vm1453_vm4, %v4618_v13, %v1452_v38  ;;  %v1403_v60 = vmul.f32 %v4614_v6, %v4551_v12 }
 0x217   : > { %v1621_v17 = vsel %vm1458_vm7, %v1394_v49, 0.0  ;;  %vm1404_vm6 = vcmp.eq.f32.partialorder %v4551_v12, inf  ;;  %vm1406_vm8 = vcmp.eq.f32.partialorder %v4551_v12, 0.0  ;;  %v1407_v8 = vand.u32 2147483648, %v4551_v12 }
 0x218   : > { %1643 = vadd.xlane.f32.xlu0 %v1642_v20  ;;  %v1457_v34 = vsel %vm1455_vm5, %v1456_v39, %v1454_v7  ;;  %v1417_v0 = vmul.f32 %v4639_v14, %v4579_v46  ;;  %v1405_v9 = vsel %vm1404_vm6, %v4551_v12, %v1403_v60  ;;  %vm1418_vm9 = vcmp.eq.f32.partialorder %v4579_v46, inf }
 0x219   : > { %v1648_v32 = vsel %vm1458_vm7, %v1457_v34, 0.0  ;;  %vm1420_vm10 = vcmp.eq.f32.partialorder %v4579_v46, 0.0  ;;  %v1408_v6 = vsel %vm1406_vm8, %v1407_v8, %v1405_v9  ;;  %v1421_v11 = vand.u32 2147483648, %v4579_v46 }
 0x21a   : > { %1622 = vadd.xlane.f32.xlu1 %v1621_v17  ;;  %v1419_v13 = vsel %vm1418_vm9, %v4579_v46, %v1417_v0  ;;  %v1431_v63 = vmul.f32 %v4661_v22, %v4605_v5  ;;  %vm1432_vm11 = vcmp.eq.f32.partialorder %v4605_v5, inf  ;;  %v1627_v14 = vsel %vm1458_vm7, %v1408_v6, 0.0 }
 0x21b   : > { %v1422_v30 = vsel %vm1420_vm10, %v1421_v11, %v1419_v13  ;;  %v1435_v12 = vand.u32 2147483648, %v4605_v5  ;;  %v1445_v4 = vmul.f32 %v3401_v44, %v4631_v53  ;;  %vm1434_vm12 = vcmp.eq.f32.partialorder %v4605_v5, 0.0 }
 0x21c   : > { %1649 = vadd.xlane.f32.xlu0 %v1648_v32  ;;  %v1433_v36 = vsel %vm1432_vm11, %v4605_v5, %v1431_v63  ;;  %vm1446_vm13 = vcmp.eq.f32.partialorder %v4631_v53, inf  ;;  %v1651_v46 = vlaneseq  ;;  %v1633_v42 = vsel %vm1458_vm7, %v1422_v30, 0.0 }
 0x21d   : > { %v1464_v15 = vpop.xlane.xlu1 %1463  ;;  %v1436_v24 = vsel %vm1434_vm12, %v1435_v12, %v1433_v36  ;;  %v1447_v21 = vsel %vm1446_vm13, %v4631_v53, %v1445_v4  ;;  %vm1448_vm14 = vcmp.eq.f32.partialorder %v4631_v53, 0.0  ;;  %v1449_v26 = vand.u32 2147483648, %v4631_v53 }
 0x21e   : > { %1628 = vadd.xlane.f32.xlu1 %v1627_v14  ;;  %v4728_v28 = vshrl.u32 %v1651_v46, 7  ;;  %v4738_v23 = vstv %s3600_s6  ;;  %v4741_v47 = vstv %s3595_s4  ;;  %v1639_v2 = vsel %vm1458_vm7, %v1436_v24, 0.0  ;;  %s190_s4 = sand.u32 1, %s3472_s13  }
 0x21f   : > { %v1450_v29 = vsel %vm1448_vm14, %v1449_v26, %v1447_v21  ;;  %vm2678_vm0 = vcmask 7168   ;;  %s2924_s6 = sshll.u32 %s190_s4, 3  ;;  %s2818_s11 = scalar_lea.sflag [#allocation3], %s190_s4 }
 0x220   : > { %v1653_v5 = vadd.s32 8, %v4728_v28  ;;  %v1720_v1 = vand.u32 7, %v4728_v28  ;;  %v1654_v18 = vadd.s32 16, %v4728_v28  ;;  %v1655_v22 = vadd.s32 24, %v4728_v28  ;;  %s192_s28 = scalar_lea.vmem [#allocation2], %s2924_s6 }
 0x221   : > { %v1461_v51 = vpop.xlane.xlu1 %1460  ;;  %v1656_v55 = vadd.s32 32, %v4728_v28  ;;  %v1657_v62 = vadd.s32 40, %v4728_v28  ;;  %v1645_v48 = vsel %vm1458_vm7, %v1450_v29, 0.0  ;;  %v1659_v16 = vadd.s32 56, %v4728_v28  ;;  %s2833_s29 = sshll.u32 %s192_s28, 4  ;;  %s5025_s29 = int_to_ptr.vmem [resolvable:$true] %s2833_s29 }
 0x222   : > { %1634 = vadd.xlane.f32.xlu1 %v1633_v42  ;;  %v1727_v37 = vand.u32 7, %v1653_v5  ;;  %v2485_v50 = vadd.s32 %v4738_v23, %v1720_v1  ;;  %v1734_v43 = vand.u32 7, %v1654_v18  ;;  %v1741_v31 = vand.u32 7, %v1655_v22  ;;  %s3402_s20 = scalar_lea.vmem %s5025_s29, 128  ;;  %p3409_p4 = scmp.lt.s32.totalorder %s5025_s29, %s3407_s16 }
 0x223   : > { %v1748_v27 = vand.u32 7, %v1656_v55  ;;  %v1467_v59 = vpop.xlane.xlu0 %1466  ;;  %v1755_v25 = vand.u32 7, %v1657_v62  ;;  %v1658_v57 = vadd.s32 48, %v4728_v28  ;;  %v1769_v17 = vand.u32 7, %v1659_v16  ;;  %p3403_p0 = scmp.ne.s32.totalorder %s5025_s29, %s3402_s20  ;;  %p3410_p5 = scmp.lt.s32.totalorder %s3408_s21, %s3402_s20 }
 0x224   : > { %v2486_v10 = vadd.s32 %v4738_v23, %v1727_v37  ;;  %vm2550_vm15 = vcmp.ge.s32.totalorder %v2485_v50, %v4741_v47  ;;  %v2487_v41 = vadd.s32 %v4738_v23, %v1734_v43  ;;  %v2488_v56 = vadd.s32 %v4738_v23, %v1741_v31 }
 0x225   : > { %v1470_v33 = vpop.xlane.xlu1 %1469  ;;  %v2614_v44 = vsel %vm2550_vm15, %v1461_v51, 0.0  ;;  %v2489_v40 = vadd.s32 %v4738_v23, %v1748_v27  ;;  %v2490_v35 = vadd.s32 %v4738_v23, %v1755_v25  ;;  %v1762_v20 = vand.u32 7, %v1658_v57  ;;  %p3404_p1 = pnand %p3403_p0, %p3573_p3  ;;  %p3411_p6 = por %p3410_p5, %p3409_p4 }
 0x226   : > { %1640 = vadd.xlane.f32.xlu1 %v1639_v2  ;;  %vm2551_vm1 = vcmp.ge.s32.totalorder %v2486_v10, %v4741_v47  ;;  %v2679_v53 = vsel %vm2678_vm0, %v2614_v44, 0.0  ;;  %vm2552_vm2 = vcmp.ge.s32.totalorder %v2487_v41, %v4741_v47  ;;  %vm2553_vm3 = vcmp.ge.s32.totalorder %v2488_v56, %v4741_v47 }
 0x227   : > { %v2615_v45 = vsel %vm2551_vm1, %v1464_v15, 0.0  ;;  %v2616_v52 = vsel %vm2552_vm2, %v1467_v59, 0.0  ;;  %vm2554_vm4 = vcmp.ge.s32.totalorder %v2489_v40, %v4741_v47  ;;  %v2617_v3 = vsel %vm2553_vm3, %v1470_v33, 0.0  ;;  %p3405_p2 = pneg %p3404_p1 }
 0x228   : > { %v2680_v54 = vsel %vm2678_vm0, %v2615_v45, 0.0  ;;  %v2682_v61 = vsel %vm2678_vm0, %v2616_v52, 0.0  ;;  %v1661_v7 = vadd.s32 72, %v4728_v28  ;;  %v2684_v60 = vsel %vm2678_vm0, %v2617_v3, 0.0 }
 0x229   : > { %v1476_v58 = vpop.xlane.xlu1 %1475  ;;  %v2681_v19 = vadd.f32 %v2680_v54, %v2679_v53  ;;  %v2491_v34 = vadd.s32 %v4738_v23, %v1762_v20  ;;  %v1660_v8 = vadd.s32 64, %v4728_v28  ;;  %vm2555_vm7 = vcmp.ge.s32.totalorder %v2490_v35, %v4741_v47  ;;  %p3412_p7 = pnand %p3411_p6, %p3405_p2 }
 0x22a   : > { %1646 = vadd.xlane.f32.xlu1 %v1645_v48  ;;  %v1663_v0 = vadd.s32 88, %v4728_v28  ;;  %v2492_v11 = vadd.s32 %v4738_v23, %v1769_v17  ;;  %v1783_v63 = vand.u32 7, %v1661_v7  ;;  %v2619_v14 = vsel %vm2555_vm7, %v1476_v58, 0.0 }
 0x22b   : > { %v2683_v49 = vadd.f32 %v2682_v61, %v2681_v19  ;;  %vm2556_vm5 = vcmp.ge.s32.totalorder %v2491_v34, %v4741_v47  ;;  %v1776_v30 = vand.u32 7, %v1660_v8  ;;  %v1662_v12 = vadd.s32 80, %v4728_v28 }
 0x22c   : > { %v1797_v36 = vand.u32 7, %v1663_v0  ;;  %v1665_v15 = vadd.s32 104, %v4728_v28  ;;  %v2688_v24 = vsel %vm2678_vm0, %v2619_v14, 0.0  ;;  %vm2557_vm6 = vcmp.ge.s32.totalorder %v2492_v11, %v4741_v47 }
 0x22d   : > { %v1473_v38 = vpop.xlane.xlu1 %1472  ;;  %v2685_v13 = vadd.f32 %v2684_v60, %v2683_v49  ;;  %v2494_v26 = vadd.s32 %v4738_v23, %v1783_v63  ;;  %v2493_v1 = vadd.s32 %v4738_v23, %v1776_v30  ;;  %v1790_v51 = vand.u32 7, %v1662_v12 }
 0x22e   : > { %v2618_v39 = vsel %vm2554_vm4, %v1473_v38, 0.0  ;;  %v1664_v18 = vadd.s32 96, %v4728_v28  ;;  %v2496_v22 = vadd.s32 %v4738_v23, %v1797_v36  ;;  %v1811_v37 = vand.u32 7, %v1665_v15 }
 0x22f   : > { %v2686_v32 = vsel %vm2678_vm0, %v2618_v39, 0.0  ;;  %v1667_v43 = vadd.s32 120, %v4728_v28  ;;  %vm2559_vm8 = vcmp.ge.s32.totalorder %v2494_v26, %v4741_v47  ;;  %vm2558_vm9 = vcmp.ge.s32.totalorder %v2493_v1, %v4741_v47 }
 0x230   : > { %v2687_v4 = vadd.f32 %v2686_v32, %v2685_v13  ;;  %v2495_v62 = vadd.s32 %v4738_v23, %v1790_v51  ;;  %v1804_v27 = vand.u32 7, %v1664_v18  ;;  %v1666_v10 = vadd.s32 112, %v4728_v28 }
 0x231   : > { %v1482_v9 = vpop.xlane.xlu1 %1481  ;;  %vm2561_vm10 = vcmp.ge.s32.totalorder %v2496_v22, %v4741_v47  ;;  %v2498_v59 = vadd.s32 %v4738_v23, %v1811_v37  ;;  %v1825_v56 = vand.u32 7, %v1667_v43  ;;  %v1669_v44 = vadd.s32 136, %v4728_v28 }
 0x232   : > { %v1494_v6 = vpop.xlane.xlu0 %1493  ;;  %v2689_v55 = vadd.f32 %v2688_v24, %v2687_v4  ;;  %v2621_v2 = vsel %vm2557_vm6, %v1482_v9, 0.0  ;;  %v1668_v52 = vadd.s32 128, %v4728_v28  ;;  %vm2560_vm11 = vcmp.ge.s32.totalorder %v2495_v62, %v4741_v47 }
 0x233   : > { %v2692_v41 = vsel %vm2678_vm0, %v2621_v2, 0.0  ;;  %v2497_v54 = vadd.s32 %v4738_v23, %v1804_v27  ;;  %v1818_v58 = vand.u32 7, %v1666_v10  ;;  %v2500_v61 = vadd.s32 %v4738_v23, %v1825_v56 }
 0x234   : > { %v1839_v57 = vand.u32 7, %v1669_v44  ;;  %v2625_v38 = vsel %vm2561_vm10, %v1494_v6, 0.0  ;;  %vm2563_vm12 = vcmp.ge.s32.totalorder %v2498_v59, %v4741_v47  ;;  %v1832_v7 = vand.u32 7, %v1668_v52 }
 0x235   : > { %v1479_v46 = vpop.xlane.xlu1 %1478  ;;  %vm2562_vm13 = vcmp.ge.s32.totalorder %v2497_v54, %v4741_v47  ;;  %v2499_v17 = vadd.s32 %v4738_v23, %v1818_v58  ;;  %v1671_v34 = vadd.s32 152, %v4728_v28  ;;  %v1670_v8 = vadd.s32 144, %v4728_v28 }
 0x236   : > { %v1500_v42 = vpop.xlane.xlu0 %1499  ;;  %v2620_v21 = vsel %vm2556_vm5, %v1479_v46, 0.0  ;;  %v2700_v0 = vsel %vm2678_vm0, %v2625_v38, 0.0  ;;  %vm2565_vm14 = vcmp.ge.s32.totalorder %v2500_v61, %v4741_v47  ;;  %v2502_v6 = vadd.s32 %v4738_v23, %v1839_v57 }
 0x237   : > { %v2690_v5 = vsel %vm2678_vm0, %v2620_v21, 0.0  ;;  %v2627_v9 = vsel %vm2563_vm12, %v1500_v42, 0.0  ;;  %v1673_v14 = vadd.s32 168, %v4728_v28  ;;  %vm2564_vm15 = vcmp.ge.s32.totalorder %v2499_v17, %v4741_v47 }
 0x238   : > { %v2691_v29 = vadd.f32 %v2690_v5, %v2689_v55  ;;  %v2501_v12 = vadd.s32 %v4738_v23, %v1832_v7  ;;  %v1853_v4 = vand.u32 7, %v1671_v34  ;;  %v1846_v46 = vand.u32 7, %v1670_v8 }
 0x239   : > { %v1488_v50 = vpop.xlane.xlu1 %1487  ;;  %v1672_v15 = vadd.s32 160, %v4728_v28  ;;  %v2704_v42 = vsel %vm2678_vm0, %v2627_v9, 0.0  ;;  %vm2567_vm1 = vcmp.ge.s32.totalorder %v2502_v6, %v4741_v47  ;;  %v1867_v1 = vand.u32 7, %v1673_v14 }
 0x23a   : > { %v1506_v31 = vpop.xlane.xlu0 %1505  ;;  %v2623_v40 = vsel %vm2559_vm8, %v1488_v50, 0.0  ;;  %v2693_v48 = vadd.f32 %v2692_v41, %v2691_v29  ;;  %vm2566_vm2 = vcmp.ge.s32.totalorder %v2501_v12, %v4741_v47  ;;  %v2504_v18 = vadd.s32 %v4738_v23, %v1853_v4 }
 0x23b   : > { %v2696_v16 = vsel %vm2678_vm0, %v2623_v40, 0.0  ;;  %v2629_v21 = vsel %vm2565_vm14, %v1506_v31, 0.0  ;;  %v2503_v37 = vadd.s32 %v4738_v23, %v1846_v46  ;;  %v1860_v50 = vand.u32 7, %v1672_v15 }
 0x23c   : > { %v2708_v43 = vsel %vm2678_vm0, %v2629_v21, 0.0  ;;  %v1675_v31 = vadd.s32 184, %v4728_v28  ;;  %v1674_v29 = vadd.s32 176, %v4728_v28  ;;  %v2506_v41 = vadd.s32 %v4738_v23, %v1867_v1 }
 0x23d   : > { %v1485_v33 = vpop.xlane.xlu1 %1484  ;;  %vm2569_vm3 = vcmp.ge.s32.totalorder %v2504_v18, %v4741_v47  ;;  %vm2568_vm4 = vcmp.ge.s32.totalorder %v2503_v37, %v4741_v47  ;;  %v2505_v44 = vadd.s32 %v4738_v23, %v1860_v50  ;;  %v1676_v54 = vadd.s32 192, %v4728_v28 }
 0x23e   : > { %v1512_v53 = vpop.xlane.xlu0 %1511  ;;  %v2622_v45 = vsel %vm2558_vm9, %v1485_v33, 0.0  ;;  %vm2571_vm7 = vcmp.ge.s32.totalorder %v2506_v41, %v4741_v47  ;;  %v1678_v8 = vadd.s32 208, %v4728_v28  ;;  %v1680_v15 = vadd.s32 224, %v4728_v28 }
 0x23f   : > { %v2694_v25 = vsel %vm2678_vm0, %v2622_v45, 0.0  ;;  %v2631_v62 = vsel %vm2567_vm1, %v1512_v53, 0.0  ;;  %v1874_v45 = vand.u32 7, %v1674_v29  ;;  %v1677_v53 = vadd.s32 200, %v4728_v28 }
 0x240   : > { %v2695_v19 = vadd.f32 %v2694_v25, %v2693_v48  ;;  %v2712_v40 = vsel %vm2678_vm0, %v2631_v62, 0.0  ;;  %v1881_v48 = vand.u32 7, %v1675_v31  ;;  %vm2570_vm5 = vcmp.ge.s32.totalorder %v2505_v44, %v4741_v47 }
 0x241   : > { %v1491_v3 = vpop.xlane.xlu1 %1490  ;;  %v2507_v38 = vadd.s32 %v4738_v23, %v1874_v45  ;;  %v1902_v12 = vand.u32 7, %v1678_v8  ;;  %v1683_v50 = vadd.s32 248, %v4728_v28  ;;  %v1682_v31 = vadd.s32 240, %v4728_v28 }
 0x242   : > { %v4798_v35 = vpop.xlane.xlu0 %1517  ;;  %v2697_v20 = vadd.f32 %v2696_v16, %v2695_v19  ;;  %v2624_v49 = vsel %vm2560_vm11, %v1491_v3, 0.0  ;;  %v2508_v57 = vadd.s32 %v4738_v23, %v1881_v48  ;;  %v1685_v48 = vadd.s32 264, %v4728_v28 }
 0x243   : > { %v2698_v39 = vsel %vm2678_vm0, %v2624_v49, 0.0  ;;  %v2633_v58 = vsel %vm2569_vm3, %v4798_v35, 0.0  ;;  %v1895_v49 = vand.u32 7, %v1677_v53  ;;  %v1888_v35 = vand.u32 7, %v1676_v54 }
 0x244   : > { %v2699_v60 = vadd.f32 %v2698_v39, %v2697_v20  ;;  %v2716_v20 = vsel %vm2678_vm0, %v2633_v58, 0.0  ;;  %v1679_v39 = vadd.s32 216, %v4728_v28  ;;  %vm2573_vm6 = vcmp.ge.s32.totalorder %v2508_v57, %v4741_v47 }
 0x245   : > { %v1497_v32 = vpop.xlane.xlu1 %1496  ;;  %vm2572_vm8 = vcmp.ge.s32.totalorder %v2507_v38, %v4741_v47  ;;  %v2511_v1 = vadd.s32 %v4738_v23, %v1902_v12  ;;  %v1930_v44 = vand.u32 7, %v1682_v31  ;;  %v1684_v53 = vadd.s32 256, %v4728_v28 }
 0x246   : > { %v2701_v13 = vadd.f32 %v2700_v0, %v2699_v60  ;;  %v2626_v11 = vsel %vm2562_vm13, %v1497_v32, 0.0 }
 0x247   : > { %v2702_v63 = vsel %vm2678_vm0, %v2626_v11, 0.0  ;;  %v2509_v11 = vadd.s32 %v4738_v23, %v1888_v35  ;;  %vm2576_vm12 = vcmp.ge.s32.totalorder %v2511_v1, %v4741_v47  ;;  %v1944_v38 = vand.u32 7, %v1684_v53 }
 0x248   : > { %v1524_v30 = vpop.xlane.xlu0 %1523  ;;  %v2703_v36 = vadd.f32 %v2702_v63, %v2701_v13  ;;  %v2510_v13 = vadd.s32 %v4738_v23, %v1895_v49  ;;  %v1909_v63 = vand.u32 7, %v1679_v39  ;;  %v1687_v49 = vadd.s32 280, %v4728_v28 }
 0x249   : > { %v1503_v24 = vpop.xlane.xlu1 %1502  ;;  %v2635_v7 = vsel %vm2571_vm7, %v1524_v30, 0.0  ;;  %vm2574_vm10 = vcmp.ge.s32.totalorder %v2509_v11, %v4741_v47 }
 0x24a   : > { %v2705_v26 = vadd.f32 %v2704_v42, %v2703_v36  ;;  %v2628_v5 = vsel %vm2564_vm15, %v1503_v24, 0.0  ;;  %v2720_v6 = vsel %vm2678_vm0, %v2635_v7, 0.0  ;;  %v1681_v36 = vadd.s32 232, %v4728_v28 }
 0x24b   : > { %v2706_v51 = vsel %vm2678_vm0, %v2628_v5, 0.0  ;;  %vm2575_vm9 = vcmp.ge.s32.totalorder %v2510_v13, %v4741_v47  ;;  %v2512_v5 = vadd.s32 %v4738_v23, %v1909_v63  ;;  %v1689_v63 = vadd.s32 296, %v4728_v28 }
 0x24c   : > { %v2707_v22 = vadd.f32 %v2706_v51, %v2705_v26  ;;  %v1530_v55 = vpop.xlane.xlu0 %1529  ;;  %v1923_v51 = vand.u32 7, %v1681_v36 }
 0x24d   : > { %v2637_v4 = vsel %vm2573_vm6, %v1530_v55, 0.0  ;;  %v1916_v55 = vand.u32 7, %v1680_v15  ;;  %vm2577_vm11 = vcmp.ge.s32.totalorder %v2512_v5, %v4741_v47 }
 0x24e   : > { %v1509_v2 = vpop.xlane.xlu1 %1508  ;;  %v2709_v27 = vadd.f32 %v2708_v43, %v2707_v22  ;;  %v2724_v26 = vsel %vm2678_vm0, %v2637_v4, 0.0 }
 0x24f   : > { %v2630_v10 = vsel %vm2566_vm2, %v1509_v2, 0.0  ;;  %v2513_v41 = vadd.s32 %v4738_v23, %v1916_v55 }
 0x250   : > { %v2710_v59 = vsel %vm2678_vm0, %v2630_v10, 0.0  ;;  %v1536_v33 = vpop.xlane.xlu0 %1535  ;;  %v2514_v10 = vadd.s32 %v4738_v23, %v1923_v51  ;;  %v1691_v51 = vadd.s32 312, %v4728_v28 }
 0x251   : > { %v2711_v56 = vadd.f32 %v2710_v59, %v2709_v27  ;;  %v2639_v37 = vsel %vm2575_vm9, %v1536_v33, 0.0  ;;  %v1937_v59 = vand.u32 7, %v1683_v50  ;;  %vm2578_vm14 = vcmp.ge.s32.totalorder %v2513_v41, %v4741_v47 }
 0x252   : > { %v1515_v25 = vpop.xlane.xlu1 %1514  ;;  %v2728_v27 = vsel %vm2678_vm0, %v2639_v37, 0.0  ;;  %vm2579_vm13 = vcmp.ge.s32.totalorder %v2514_v10, %v4741_v47 }
 0x253   : > { %v2713_v52 = vadd.f32 %v2712_v40, %v2711_v56  ;;  %v2632_v19 = vsel %vm2568_vm4, %v1515_v25, 0.0 }
 0x254   : > { %v2714_v16 = vsel %vm2678_vm0, %v2632_v19, 0.0  ;;  %v1542_v61 = vpop.xlane.xlu0 %1541  ;;  %v2516_v19 = vadd.s32 %v4738_v23, %v1937_v59  ;;  %v1693_v59 = vadd.s32 328, %v4728_v28 }
 0x255   : > { %v2715_v3 = vadd.f32 %v2714_v16, %v2713_v52  ;;  %v2641_v40 = vsel %vm2577_vm11, %v1542_v61, 0.0  ;;  %v2515_v16 = vadd.s32 %v4738_v23, %v1930_v44  ;;  %v1951_v61 = vand.u32 7, %v1685_v48 }
 0x256   : > { %v1521_v17 = vpop.xlane.xlu1 %1520  ;;  %v2732_v58 = vsel %vm2678_vm0, %v2641_v40, 0.0  ;;  %vm2581_vm15 = vcmp.ge.s32.totalorder %v2516_v19, %v4741_v47 }
 0x257   : > { %v2717_v60 = vadd.f32 %v2716_v20, %v2715_v3  ;;  %v2634_v34 = vsel %vm2570_vm5, %v1521_v17, 0.0  ;;  %v1686_v17 = vadd.s32 272, %v4728_v28  ;;  %vm2580_vm1 = vcmp.ge.s32.totalorder %v2515_v16, %v4741_v47 }
 0x258   : > { %v2718_v0 = vsel %vm2678_vm0, %v2634_v34, 0.0  ;;  %v2518_v8 = vadd.s32 %v4738_v23, %v1951_v61 }
 0x259   : > { %v1548_v32 = vpop.xlane.xlu0 %1547  ;;  %v2719_v9 = vadd.f32 %v2718_v0, %v2717_v60  ;;  %v2517_v0 = vadd.s32 %v4738_v23, %v1944_v38  ;;  %v1958_v13 = vand.u32 7, %v1686_v17 }
 0x25a   : > { %v2643_v20 = vsel %vm2579_vm13, %v1548_v32, 0.0  ;;  %v1965_v32 = vand.u32 7, %v1687_v49  ;;  %vm2583_vm2 = vcmp.ge.s32.totalorder %v2518_v8, %v4741_v47 }
 0x25b   : > { %v2721_v14 = vadd.f32 %v2720_v6, %v2719_v9  ;;  %v1527_v30 = vpop.xlane.xlu1 %1526  ;;  %v2736_v34 = vsel %vm2678_vm0, %v2643_v20, 0.0  ;;  %vm2582_vm3 = vcmp.ge.s32.totalorder %v2517_v0, %v4741_v47 }
 0x25c   : > { %v2636_v46 = vsel %vm2572_vm8, %v1527_v30, 0.0  ;;  %v1688_v30 = vadd.s32 288, %v4728_v28  ;;  %v2520_v15 = vadd.s32 %v4738_v23, %v1965_v32 }
 0x25d   : > { %v2722_v42 = vsel %vm2678_vm0, %v2636_v46, 0.0 }
 0x25e   : > { %v1554_v24 = vpop.xlane.xlu0 %1553  ;;  %v2723_v21 = vadd.f32 %v2722_v42, %v2721_v14  ;;  %v2519_v42 = vadd.s32 %v4738_v23, %v1958_v13  ;;  %v1972_v5 = vand.u32 7, %v1688_v30  ;;  %vm2585_vm4 = vcmp.ge.s32.totalorder %v2520_v15, %v4741_v47 }
 0x25f   : > { %v2645_v11 = vsel %vm2581_vm15, %v1554_v24, 0.0  ;;  %v1979_v24 = vand.u32 7, %v1689_v63 }
 0x260   : > { %v2725_v18 = vadd.f32 %v2724_v26, %v2723_v21  ;;  %v1533_v22 = vpop.xlane.xlu1 %1532  ;;  %v2740_v46 = vsel %vm2678_vm0, %v2645_v11, 0.0  ;;  %vm2584_vm7 = vcmp.ge.s32.totalorder %v2519_v42, %v4741_v47 }
 0x261   : > { %v2638_v43 = vsel %vm2574_vm10, %v1533_v22, 0.0  ;;  %v1690_v22 = vadd.s32 304, %v4728_v28  ;;  %v2522_v31 = vadd.s32 %v4738_v23, %v1979_v24  ;;  %v1698_v24 = vadd.s32 368, %v4728_v28 }
 0x262   : > { %v2726_v2 = vsel %vm2678_vm0, %v2638_v43, 0.0 }
 0x263   : > { %v1560_v29 = vpop.xlane.xlu0 %1559  ;;  %v2727_v62 = vadd.f32 %v2726_v2, %v2725_v18  ;;  %v2521_v2 = vadd.s32 %v4738_v23, %v1972_v5  ;;  %v1986_v10 = vand.u32 7, %v1690_v22  ;;  %vm2587_vm5 = vcmp.ge.s32.totalorder %v2522_v31, %v4741_v47 }
 0x264   : > { %v2647_v1 = vsel %vm2583_vm2, %v1560_v29, 0.0  ;;  %v1993_v29 = vand.u32 7, %v1691_v51  ;;  %v2042_v31 = vand.u32 7, %v1698_v24 }
 0x265   : > { %v2729_v56 = vadd.f32 %v2728_v27, %v2727_v62  ;;  %v1539_v33 = vpop.xlane.xlu1 %1538  ;;  %v2744_v43 = vsel %vm2678_vm0, %v2647_v1, 0.0  ;;  %vm2586_vm6 = vcmp.ge.s32.totalorder %v2521_v2, %v4741_v47  ;;  %v1701_v1 = vadd.s32 392, %v4728_v28 }
 0x266   : > { %v2640_v45 = vsel %vm2576_vm12, %v1539_v33, 0.0  ;;  %v1692_v33 = vadd.s32 320, %v4728_v28  ;;  %v2524_v53 = vadd.s32 %v4738_v23, %v1993_v29 }
 0x267   : > { %v2730_v52 = vsel %vm2678_vm0, %v2640_v45, 0.0 }
 0x268   : > { %v1566_v25 = vpop.xlane.xlu0 %1565  ;;  %v2731_v54 = vadd.f32 %v2730_v52, %v2729_v56  ;;  %v2523_v52 = vadd.s32 %v4738_v23, %v1986_v10  ;;  %v2000_v16 = vand.u32 7, %v1692_v33  ;;  %vm2589_vm8 = vcmp.ge.s32.totalorder %v2524_v53, %v4741_v47 }
 0x269   : > { %v2649_v41 = vsel %vm2585_vm4, %v1566_v25, 0.0  ;;  %v2007_v25 = vand.u32 7, %v1693_v59  ;;  %v2063_v10 = vand.u32 7, %v1701_v1  ;;  %v1702_v33 = vadd.s32 400, %v4728_v28 }
 0x26a   : > { %v2733_v57 = vadd.f32 %v2732_v58, %v2731_v54  ;;  %v1545_v3 = vpop.xlane.xlu1 %1544  ;;  %v2748_v45 = vsel %vm2678_vm0, %v2649_v41, 0.0  ;;  %v1695_v54 = vadd.s32 344, %v4728_v28  ;;  %vm2588_vm9 = vcmp.ge.s32.totalorder %v2523_v52, %v4741_v47 }
 0x26b   : > { %v2642_v39 = vsel %vm2578_vm14, %v1545_v3, 0.0  ;;  %v1694_v3 = vadd.s32 336, %v4728_v28  ;;  %v2526_v17 = vadd.s32 %v4738_v23, %v2007_v25  ;;  %v2534_v25 = vadd.s32 %v4738_v23, %v2063_v10 }
 0x26c   : > { %v2734_v35 = vsel %vm2678_vm0, %v2642_v39, 0.0  ;;  %v1708_v1 = vadd.s32 448, %v4728_v28 }
 0x26d   : > { %v1572_v7 = vpop.xlane.xlu0 %1571  ;;  %v2735_v60 = vadd.f32 %v2734_v35, %v2733_v57  ;;  %v2021_v35 = vand.u32 7, %v1695_v54  ;;  %v2014_v0 = vand.u32 7, %v1694_v3  ;;  %vm2591_vm10 = vcmp.ge.s32.totalorder %v2526_v17, %v4741_v47 }
 0x26e   : > { %v2651_v61 = vsel %vm2587_vm5, %v1572_v7, 0.0  ;;  %v1697_v7 = vadd.s32 360, %v4728_v28  ;;  %v2112_v10 = vand.u32 7, %v1708_v1 }
 0x26f   : > { %v2737_v9 = vadd.f32 %v2736_v34, %v2735_v60  ;;  %v1551_v6 = vpop.xlane.xlu1 %1550  ;;  %v2752_v39 = vsel %vm2678_vm0, %v2651_v61, 0.0  ;;  %v2525_v60 = vadd.s32 %v4738_v23, %v2000_v16  ;;  %v2528_v63 = vadd.s32 %v4738_v23, %v2021_v35 }
 0x270   : > { %v2644_v14 = vsel %vm2580_vm1, %v1551_v6, 0.0  ;;  %v1696_v6 = vadd.s32 352, %v4728_v28 }
 0x271   : > { %v2738_v12 = vsel %vm2678_vm0, %v2644_v14, 0.0  ;;  %vm2590_vm11 = vcmp.ge.s32.totalorder %v2525_v60, %v4741_v47  ;;  %vm2593_vm12 = vcmp.ge.s32.totalorder %v2528_v63, %v4741_v47  ;;  %v1706_v63 = vadd.s32 432, %v4728_v28 }
 0x272   : > { %v1578_v4 = vpop.xlane.xlu0 %1577  ;;  %v2739_v36 = vadd.f32 %v2738_v12, %v2737_v9  ;;  %v2035_v12 = vand.u32 7, %v1697_v7  ;;  %v2028_v42 = vand.u32 7, %v1696_v6 }
 0x273   : > { %v2653_v32 = vsel %vm2589_vm8, %v1578_v4, 0.0  ;;  %v2527_v4 = vadd.s32 %v4738_v23, %v2014_v0 }
 0x274   : > { %v2741_v21 = vadd.f32 %v2740_v46, %v2739_v36  ;;  %v1557_v26 = vpop.xlane.xlu1 %1556  ;;  %v2756_v30 = vsel %vm2678_vm0, %v2653_v32, 0.0  ;;  %v1699_v36 = vadd.s32 376, %v4728_v28 }
 0x275   : > { %v2646_v18 = vsel %vm2582_vm3, %v1557_v26, 0.0  ;;  %vm2592_vm13 = vcmp.ge.s32.totalorder %v2527_v4, %v4741_v47  ;;  %vm2599_vm3 = vcmp.ge.s32.totalorder %v2534_v25, %v4741_v47 }
 0x276   : > { %v2742_v55 = vsel %vm2678_vm0, %v2646_v18, 0.0  ;;  %v2530_v18 = vadd.s32 %v4738_v23, %v2035_v12  ;;  %v2049_v22 = vand.u32 7, %v1699_v36 }
 0x277   : > { %v1584_v37 = vpop.xlane.xlu0 %1583  ;;  %v2743_v50 = vadd.f32 %v2742_v55, %v2741_v21 }
 0x278   : > { %v2655_v21 = vsel %vm2591_vm10, %v1584_v37, 0.0  ;;  %v1700_v37 = vadd.s32 384, %v4728_v28  ;;  %vm2595_vm14 = vcmp.ge.s32.totalorder %v2530_v18, %v4741_v47  ;;  %v2532_v59 = vadd.s32 %v4738_v23, %v2049_v22 }
 0x279   : > { %v2745_v62 = vadd.f32 %v2744_v43, %v2743_v50  ;;  %v1563_v27 = vpop.xlane.xlu1 %1562  ;;  %v2760_v50 = vsel %vm2678_vm0, %v2655_v21, 0.0  ;;  %v2529_v43 = vadd.s32 %v4738_v23, %v2028_v42 }
 0x27a   : > { %v2648_v56 = vsel %vm2584_vm7, %v1563_v27, 0.0  ;;  %v2056_v53 = vand.u32 7, %v1700_v37  ;;  %vm2597_vm1 = vcmp.ge.s32.totalorder %v2532_v59, %v4741_v47 }
 0x27b   : > { %v2746_v44 = vsel %vm2678_vm0, %v2648_v56, 0.0  ;;  %vm2594_vm15 = vcmp.ge.s32.totalorder %v2529_v43, %v4741_v47  ;;  %v1711_v43 = vadd.s32 472, %v4728_v28 }
 0x27c   : > { %v1590_v40 = vpop.xlane.xlu0 %1589  ;;  %v2747_v48 = vadd.f32 %v2746_v44, %v2745_v62  ;;  %v1703_v62 = vadd.s32 408, %v4728_v28 }
 0x27d   : > { %v2657_v27 = vsel %vm2593_vm12, %v1590_v40, 0.0 }
 0x27e   : > { %v2749_v58 = vadd.f32 %v2748_v45, %v2747_v48  ;;  %v1569_v19 = vpop.xlane.xlu1 %1568  ;;  %v2531_v45 = vadd.s32 %v4738_v23, %v2042_v31  ;;  %v2764_v52 = vsel %vm2678_vm0, %v2657_v27, 0.0  ;;  %v2077_v40 = vand.u32 7, %v1703_v62 }
 0x27f   : > { %v2650_v57 = vsel %vm2586_vm6, %v1569_v19, 0.0  ;;  %v1705_v19 = vadd.s32 424, %v4728_v28 }
 0x280   : > { %v2750_v38 = vsel %vm2678_vm0, %v2650_v57, 0.0  ;;  %v2070_v57 = vand.u32 7, %v1702_v33  ;;  %vm2596_vm2 = vcmp.ge.s32.totalorder %v2531_v45, %v4741_v47  ;;  %v1713_v45 = vadd.s32 488, %v4728_v28 }
 0x281   : > { %v4909_v20 = vpop.xlane.xlu0 %1595  ;;  %v2751_v49 = vadd.f32 %v2750_v38, %v2749_v58  ;;  %v2533_v38 = vadd.s32 %v4738_v23, %v2056_v53 }
 0x282   : > { %v2659_v16 = vsel %vm2595_vm14, %v4909_v20, 0.0  ;;  %v2091_v20 = vand.u32 7, %v1705_v19  ;;  %v1712_v19 = vadd.s32 480, %v4728_v28 }
 0x283   : > { %v2753_v34 = vadd.f32 %v2752_v39, %v2751_v49  ;;  %v1575_v8 = vpop.xlane.xlu1 %1574  ;;  %v1704_v49 = vadd.s32 416, %v4728_v28  ;;  %v2536_v39 = vadd.s32 %v4738_v23, %v2077_v40  ;;  %v2768_v35 = vsel %vm2678_vm0, %v2659_v16, 0.0 }
 0x284   : > { %v2652_v9 = vsel %vm2588_vm9, %v1575_v8, 0.0  ;;  %vm2598_vm4 = vcmp.ge.s32.totalorder %v2533_v38, %v4741_v47 }
 0x285   : > { %v2754_v13 = vsel %vm2678_vm0, %v2652_v9, 0.0  ;;  %v2535_v9 = vadd.s32 %v4738_v23, %v2070_v57  ;;  %vm2601_vm7 = vcmp.ge.s32.totalorder %v2536_v39, %v4741_v47 }
 0x286   : > { %v4919_v11 = vpop.xlane.xlu0 %1601  ;;  %v2755_v14 = vadd.f32 %v2754_v13, %v2753_v34  ;;  %v1707_v34 = vadd.s32 440, %v4728_v28  ;;  %v2084_v13 = vand.u32 7, %v1704_v49  ;;  %v1715_v49 = vadd.s32 504, %v4728_v28 }
 0x287   : > { %v2661_v8 = vsel %vm2597_vm1, %v4919_v11, 0.0  ;;  %v2538_v11 = vadd.s32 %v4738_v23, %v2091_v20  ;;  %vm2600_vm5 = vcmp.ge.s32.totalorder %v2535_v9, %v4741_v47 }
 0x288   : > { %v2757_v46 = vadd.f32 %v2756_v30, %v2755_v14  ;;  %v1581_v15 = vpop.xlane.xlu1 %1580  ;;  %v1709_v30 = vadd.s32 456, %v4728_v28  ;;  %v2772_v12 = vsel %vm2678_vm0, %v2661_v8, 0.0  ;;  %v2105_v36 = vand.u32 7, %v1707_v34 }
 0x289   : > { %v2654_v26 = vsel %vm2590_vm11, %v1581_v15, 0.0  ;;  %vm2603_vm6 = vcmp.ge.s32.totalorder %v2538_v11, %v4741_v47  ;;  %v2140_v34 = vand.u32 7, %v1712_v19  ;;  %v1714_v8 = vadd.s32 496, %v4728_v28 }
 0x28a   : > { %v2758_v5 = vsel %vm2678_vm0, %v2654_v26, 0.0  ;;  %v2537_v26 = vadd.s32 %v4738_v23, %v2084_v13  ;;  %v2119_v22 = vand.u32 7, %v1709_v30 }
 0x28b   : > { %v1608_v51 = vpop.xlane.xlu0 %1607  ;;  %v2759_v55 = vadd.f32 %v2758_v5, %v2757_v46  ;;  %v2098_v5 = vand.u32 7, %v1706_v63  ;;  %v2161_v63 = vand.u32 7, %v1715_v49  ;;  %v2154_v11 = vand.u32 7, %v1714_v8 }
 0x28c   : > { %v2663_v46 = vsel %vm2599_vm3, %v1608_v51, 0.0  ;;  %v2540_v51 = vadd.s32 %v4738_v23, %v2105_v36  ;;  %vm2602_vm8 = vcmp.ge.s32.totalorder %v2537_v26, %v4741_v47 }
 0x28d   : > { %v2761_v2 = vadd.f32 %v2760_v50, %v2759_v55  ;;  %v1587_v29 = vpop.xlane.xlu1 %1586  ;;  %v2776_v55 = vsel %vm2678_vm0, %v2663_v46, 0.0  ;;  %v2539_v27 = vadd.s32 %v4738_v23, %v2098_v5  ;;  %v2548_v26 = vadd.s32 %v4738_v23, %v2161_v63 }
 0x28e   : > { %v2656_v41 = vsel %vm2592_vm13, %v1587_v29, 0.0  ;;  %v1710_v29 = vadd.s32 464, %v4728_v28  ;;  %vm2605_vm9 = vcmp.ge.s32.totalorder %v2540_v51, %v4741_v47  ;;  %v2545_v28 = vadd.s32 %v4738_v23, %v2140_v34 }
 0x28f   : > { %v2762_v56 = vsel %vm2678_vm0, %v2656_v41, 0.0  ;;  %v2542_v41 = vadd.s32 %v4738_v23, %v2119_v22  ;;  %vm2604_vm10 = vcmp.ge.s32.totalorder %v2539_v27, %v4741_v47  ;;  %v2547_v1 = vadd.s32 %v4738_v23, %v2154_v11 }
 0x290   : > { %v2763_v44 = vadd.f32 %v2762_v56, %v2761_v2  ;;  %v1614_v48 = vpop.xlane.xlu0 %1613  ;;  %v2126_v25 = vand.u32 7, %v1710_v29  ;;  %vm2610_vm1 = vcmp.ge.s32.totalorder %v2545_v28, %v4741_v47 }
 0x291   : > { %v2665_v31 = vsel %vm2601_vm7, %v1614_v48, 0.0  ;;  %vm2607_vm11 = vcmp.ge.s32.totalorder %v2542_v41, %v4741_v47  ;;  %vm2612_vm3 = vcmp.ge.s32.totalorder %v2547_v1, %v4741_v47 }
 0x292   : > { %v2765_v54 = vadd.f32 %v2764_v52, %v2763_v44  ;;  %v1593_v58 = vpop.xlane.xlu1 %1592  ;;  %v2780_v56 = vsel %vm2678_vm0, %v2665_v31, 0.0  ;;  %v2133_v44 = vand.u32 7, %v1711_v43  ;;  %v2543_v20 = vadd.s32 %v4738_v23, %v2126_v25 }
 0x293   : > { %v2658_v61 = vsel %vm2594_vm15, %v1593_v58, 0.0  ;;  %v2541_v58 = vadd.s32 %v4738_v23, %v2112_v10 }
 0x294   : > { %v2766_v3 = vsel %vm2678_vm0, %v2658_v61, 0.0  ;;  %v2544_v57 = vadd.s32 %v4738_v23, %v2133_v44  ;;  %vm2608_vm14 = vcmp.ge.s32.totalorder %v2543_v20, %v4741_v47 }
 0x295   : > { %v2767_v17 = vadd.f32 %v2766_v3, %v2765_v54  ;;  %v1620_v60 = vpop.xlane.xlu0 %1619  ;;  %v2147_v3 = vand.u32 7, %v1713_v45  ;;  %vm2606_vm12 = vcmp.ge.s32.totalorder %v2541_v58, %v4741_v47 }
 0x296   : > { %v2667_v53 = vsel %vm2603_vm6, %v1620_v60, 0.0  ;;  %vm2609_vm13 = vcmp.ge.s32.totalorder %v2544_v57, %v4741_v47 }
 0x297   : > { %v1599_v7 = vpop.xlane.xlu1 %1598  ;;  %v2769_v0 = vadd.f32 %v2768_v35, %v2767_v17  ;;  %v2784_v61 = vsel %vm2678_vm0, %v2667_v53, 0.0  ;;  %v2546_v9 = vadd.s32 %v4738_v23, %v2147_v3 }
 0x298   : > { %v2660_v32 = vsel %vm2596_vm2, %v1599_v7, 0.0  ;;  %vm2613_vm2 = vcmp.ge.s32.totalorder %v2548_v26, %v4741_v47 }
 0x299   : > { %v2770_v6 = vsel %vm2678_vm0, %v2660_v32, 0.0  ;;  %v1626_v24 = vpop.xlane.xlu0 %1625  ;;  %vm2611_vm15 = vcmp.ge.s32.totalorder %v2546_v9, %v4741_v47 }
 0x29a   : > { %v2771_v14 = vadd.f32 %v2770_v6, %v2769_v0  ;;  %v2669_v39 = vsel %vm2605_vm9, %v1626_v24, 0.0 }
 0x29b   : > { %v1605_v4 = vpop.xlane.xlu1 %1604  ;;  %v2788_v32 = vsel %vm2678_vm0, %v2669_v39, 0.0 }
 0x29c   : > { %v2773_v15 = vadd.f32 %v2772_v12, %v2771_v14  ;;  %v2662_v42 = vsel %vm2598_vm4, %v1605_v4, 0.0 }
 0x29d   : > { %v2774_v21 = vsel %vm2678_vm0, %v2662_v42, 0.0  ;;  %v1632_v33 = vpop.xlane.xlu0 %1631 }
 0x29e   : > { %v2775_v18 = vadd.f32 %v2774_v21, %v2773_v15  ;;  %v2671_v13 = vsel %vm2607_vm11, %v1632_v33, 0.0 }
 0x29f   : > { %v1611_v50 = vpop.xlane.xlu1 %1610  ;;  %v2792_v4 = vsel %vm2678_vm0, %v2671_v13, 0.0 }
 0x2a0   : > { %v2777_v37 = vadd.f32 %v2776_v55, %v2775_v18  ;;  %v2664_v2 = vsel %vm2600_vm5, %v1611_v50, 0.0 }
 0x2a1   : > { %v2778_v62 = vsel %vm2678_vm0, %v2664_v2, 0.0  ;;  %v1638_v60 = vpop.xlane.xlu0 %1637 }
 0x2a2   : > { %v2779_v59 = vadd.f32 %v2778_v62, %v2777_v37  ;;  %v2673_v42 = vsel %vm2609_vm13, %v1638_v60, 0.0 }
 0x2a3   : > { %v1617_v48 = vpop.xlane.xlu1 %1616  ;;  %v2796_v22 = vsel %vm2678_vm0, %v2673_v42, 0.0 }
 0x2a4   : > { %v2781_v52 = vadd.f32 %v2780_v56, %v2779_v59  ;;  %v2666_v40 = vsel %vm2602_vm8, %v1617_v48, 0.0 }
 0x2a5   : > { %v2782_v54 = vsel %vm2678_vm0, %v2666_v40, 0.0  ;;  %v1644_v46 = vpop.xlane.xlu0 %1643 }
 0x2a6   : > { %v2783_v16 = vadd.f32 %v2782_v54, %v2781_v52  ;;  %v2675_v51 = vsel %vm2611_vm15, %v1644_v46, 0.0 }
 0x2a7   : > { %v1623_v38 = vpop.xlane.xlu1 %1622  ;;  %v2800_v29 = vsel %vm2678_vm0, %v2675_v51, 0.0 }
 0x2a8   : > { %v2785_v17 = vadd.f32 %v2784_v61, %v2783_v16  ;;  %v2668_v35 = vsel %vm2604_vm10, %v1623_v38, 0.0 }
 0x2a9   : > { %v2786_v7 = vsel %vm2678_vm0, %v2668_v35, 0.0  ;;  %v1650_v31 = vpop.xlane.xlu0 %1649 }
 0x2aa   : > { %v2787_v0 = vadd.f32 %v2786_v7, %v2785_v17  ;;  %v2677_v27 = vsel %vm2613_vm2, %v1650_v31, 0.0 }
 0x2ab   : > { %v1629_v6 = vpop.xlane.xlu1 %1628  ;;  %v2804_v56 = vsel %vm2678_vm0, %v2677_v27, 0.0 }
 0x2ac   : > { %v2789_v14 = vadd.f32 %v2788_v32, %v2787_v0  ;;  %v2670_v30 = vsel %vm2606_vm12, %v1629_v6, 0.0 }
 0x2ad   : > { %v2790_v12 = vsel %vm2678_vm0, %v2670_v30, 0.0 }
 0x2ae   : > { %v2791_v36 = vadd.f32 %v2790_v12, %v2789_v14 }
 0x2af   : > { %v1635_v15 = vpop.xlane.xlu1 %1634 }
 0x2b0   : > { %v2793_v24 = vadd.f32 %v2792_v4, %v2791_v36  ;;  %v2672_v21 = vsel %vm2608_vm14, %v1635_v15, 0.0 }
 0x2b1   : > { %v2794_v5 = vsel %vm2678_vm0, %v2672_v21, 0.0 }
 0x2b2   : > { %v2795_v18 = vadd.f32 %v2794_v5, %v2793_v24 }
 0x2b3   : > { %v1641_v55 = vpop.xlane.xlu1 %1640 }
 0x2b4   : > { %v2797_v50 = vadd.f32 %v2796_v22, %v2795_v18  ;;  %v2674_v43 = vsel %vm2610_vm1, %v1641_v55, 0.0 }
 0x2b5   : > { %v2798_v37 = vsel %vm2678_vm0, %v2674_v43, 0.0 }
 0x2b6   : > { %v2799_v2 = vadd.f32 %v2798_v37, %v2797_v50 }
 0x2b7   : > { %v1647_v62 = vpop.xlane.xlu1 %1646 }
 0x2b8   : > { %v2801_v23 = vadd.f32 %v2800_v29, %v2799_v2  ;;  %v2676_v10 = vsel %vm2612_vm3, %v1647_v62, 0.0 }
 0x2b9   : > { %v2802_v41 = vsel %vm2678_vm0, %v2676_v10, 0.0 }
 0x2ba   : > { %v2803_v59 = vadd.f32 %v2802_v41, %v2801_v23 }
 0x2bc   : > { %v2805_v33 = vadd.f32 %v2804_v56, %v2803_v59 }
 0x2be   : > { %2806 = vadd.xlane.f32.xlu1 %v2805_v33 }
 0x34b   : > { %v2807_v44 = vpop.xlane.xlu1 %2806 }
 0x34c   : > { %v2808_v48 = vrot.slane %v2807_v44, 4 }
 0x34e   : > { %v2809_v47 = vadd.f32 %v2808_v48, %v2807_v44 }
 0x350   : > { %v2810_v45 = vrot.slane %v2809_v47, 2 }
 0x352   : > { %v2811_v53 = vadd.f32 %v2810_v45, %v2809_v47 }
 0x354   : > { %v2812_v52 = vrot.slane %v2811_v53, 1 }
 0x356   : > { %v2813_v40 = vadd.f32 %v2812_v52, %v2811_v53 }
 0x358   : > { %3188 = vpush %v2813_v40 }
 0x389   : > { %s3189_s7 = spop %3188 }
 0x38a   : > { %v2815_v25 = vstv %s3189_s7 }
 0x38b   : > { %2816 = vst [vmem:[%s192_s28] sm:$0xff] %v2815_v25 }
 0x38c   : > { %3415 = shalt.err (!%p3412_p7)
}
 0x38d   : > { %s3416_s4 = scalar_lea.hbm %s5030_s10, 128  ;;  %s3420_s27 = scalar_lea.hbm %s5084_s3, 512 }
 0x38e   : > { %p3417_p9 = scmp.ne.s32.totalorder %s5030_s10, %s3416_s4  ;;  %p3421_p12 = scmp.lt.u32.totalorder %s5030_s10, %s5084_s3 }
 0x38f   : > { %p3422_p13 = scmp.lt.u32.totalorder %s3420_s27, %s3416_s4  ;;  %p3424_p1 = scmp.lt.u32.totalorder %s3416_s4, %s5030_s10 }
 0x390   : > { %p3418_p10 = pnand %p3417_p9, %p3573_p3 }
 0x391   : > { %p3423_p0 = por %p3422_p13, %p3421_p12 }
 0x392   : > { %p3419_p11 = pneg %p3418_p10 }
 0x393   : > { %p3425_p2 = por %p3424_p1, %p3423_p0 }
 0x395   : > { %p3426_p4 = pnand %p3425_p2, %p3419_p11 }
 0x397   : > { %3429 = shalt.err (!%p3426_p4)
}
 0x398   : > { %3190 = dma.vmem_to_hbm [thread:$0]  (%p3573_p3), %s5025_s29, 128, %s5030_s10, %s2818_s11  }
 0x399 PF: > { %p3196_p5 = scmp.ge.s32.totalorder %s3496_s19, 2  ;;  %s2845_s7 = sand.u32 1, %s3468_s12  }
 0x39a   : > { %s2846_s8 = scalar_lea.sflag [#allocation3], %s2845_s7 }
 0x39b   : > { %p3193_p6 = pnand %p3196_p5, %p3582_p8 }
 0x39d   : > { %3463 = dma.done.wait (!%p3193_p6), %s2846_s8, 128  }
 0x39e   : > { %3465 = vsyncadd (!%p3193_p6), %s2846_s8, 4294967168  ;;  %s16_s19 = sadd.s32 1, %s3496_s19   ;;  %s5097_s12 = smov %s3472_s13 }
 0x39f   : > { %p13_p7 = scmp.ge.s32.totalorder %s16_s19, 6   ;;  %s5098_s13 = smov %s3476_s14 }
 0x3a0   : > { %s5099_s14 = smov %s3591_s30  ;;  %s5100_s15 = smov %s3488_s17 }
 0x3a1   : > { %s5101_s16 = smov %s3492_s18  ;;  %s5102_s17 = smov %s5105_s22 }
 0x3a2   : > { %s5103_s18 = smov %s5109_s23  ;;  %15 = sbr.rel (!%p13_p7) target bundleno = 5 (0x5), region = 72 }
 0x3a9   :  { %2851 = vsyncpa [#allocation3], 1 }
 0x3aa   :  { %2853 = vsyncpa [#allocation3 + $0x1], 1 }

</bundles_post_ra>
